<compile_context>
chip_gen: v7x
topology: tpu7x:2x2x1
jax: 0.10.0
libtpu: 0.0.40
codegen_flags: <defaults>
</compile_context>

<pallas_src>
import jax
import jax.numpy as jnp
from jax.experimental import pallas as pl
from jax.experimental.pallas import tpu as pltpu


# ---------------------------------------------------------------------------
# Pallas kernel: both Q heads of the TD3 critic for one batch tile.
# ---------------------------------------------------------------------------
def _critic_kernel(sa_ref, w1_ref, w25_ref, w36_ref, b_ref, q_ref):
    H = w25_ref.shape[1]                       # hidden_dim
    b = b_ref[...]                             # (3, 2H) f32 packed biases

    sa = sa_ref[...]                           # (tb, S+A) bf16 (cast in wrapper)

    # ---- layer 1, both heads fused: single K=S+A dot -> lane-dense (tb, 2H)
    h1 = jnp.dot(sa, w1_ref[...], preferred_element_type=jnp.float32) + b[0:1, :]
    h1 = jnp.maximum(h1, 0.0)                  # (tb, 2H) f32

    # lane-aligned (multiple-of-128) static slices -> Q1 / Q2 branches
    h = h1[:, :H].astype(jnp.bfloat16)
    g = h1[:, H:].astype(jnp.bfloat16)

    # ---- layer 2, per head (no wasted zero blocks on the MXU) ----
    h2 = jnp.maximum(
        jnp.dot(h, w25_ref[0], preferred_element_type=jnp.float32)
        + b[1:2, :H], 0.0)
    g2 = jnp.maximum(
        jnp.dot(g, w25_ref[1], preferred_element_type=jnp.float32)
        + b[1:2, H:], 0.0)

    # ---- layer 3: two (H, 2) dots, no concat, single (tb, 2) store ----
    q_ref[...] = (
        jnp.dot(h2.astype(jnp.bfloat16), w36_ref[0],
                preferred_element_type=jnp.float32)        # writes lane 0 (q1)
        + jnp.dot(g2.astype(jnp.bfloat16), w36_ref[1],
                  preferred_element_type=jnp.float32)      # writes lane 1 (q2)
        + b[2:3, 0:2])


# ---------------------------------------------------------------------------
# Wrapper: batch-tiled pallas_call with weights resident across the grid.
# ---------------------------------------------------------------------------
def critic_forward(state, action, packed_params, *, block_b=512):
    w1, w25, w36, b_all = packed_params
    B = state.shape[0]
    H = w25.shape[1]

    # Pre-concat + pre-cast activations (wrapper-side, ~tens of KB).
    sa = jnp.concatenate([state, action], axis=1).astype(jnp.bfloat16)
    SA = sa.shape[1]

    tb = min(block_b, B)
    tb = -(-tb // 8) * 8                       # sublane multiple
    nb = pl.cdiv(B, tb)
    bp = nb * tb
    if bp != B:                                # pad ragged batch (zeros)
        sa = jnp.pad(sa, ((0, bp - B), (0, 0)))

    def _pinned(shape):
        nd = len(shape)
        return pl.BlockSpec(shape, lambda i, _nd=nd: (0,) * _nd)

    # Per-step VMEM estimate: weights (double-buffered), activation tiles,
    # f32/bf16 intermediates.  Clamp to [32 MiB, 64 MiB] so a raised block_b
    # never hits v5e's 16 MiB default scoped limit and never exceeds v7x's
    # 64 MiB physical VMEM.
    est = (2 * 2 * (w1.size + w25.size + w36.size)      # bf16 weights x2 bufs
           + 2 * 4 * b_all.size                         # f32 biases x2 bufs
           + 2 * (tb * SA * 2 + tb * 128 * 4)           # sa tile + padded q tile
           + 32 * tb * H)                               # h1/h/g/h2/g2 temps
    vmem_limit = int(min(max(2 * est, 32 << 20), 64 << 20))

    q = pl.pallas_call(
        _critic_kernel,
        out_shape=jax.ShapeDtypeStruct((bp, 2), jnp.float32),
        grid=(nb,),
        in_specs=[
            pl.BlockSpec((tb, SA), lambda i: (i, 0)),  # state||action tile
            _pinned(w1.shape),                         # (S+A, 2H)  bf16
            _pinned(w25.shape),                        # (2, H, H)  bf16
            _pinned(w36.shape),                        # (2, H, 2)  bf16
            _pinned(b_all.shape),                      # (3, 2H)    f32
        ],
        out_specs=pl.BlockSpec((tb, 2), lambda i: (i, 0)),
        compiler_params=pltpu.CompilerParams(
            dimension_semantics=("parallel",),         # megacore on v7x if nb>=2
            vmem_limit_bytes=vmem_limit),
    )(sa, w1, w25, w36, b_all)

    q = q[:B]
    return q[:, 0:1], q[:, 1:2]                # (B, 1), (B, 1) like torch


# ---------------------------------------------------------------------------
# Deterministic init (mirrors torch weight_init: orthogonal W, zero bias),
# plus packing into the kernel-ready fused/packed layout.
# ---------------------------------------------------------------------------
def _orthogonal(key, out_features, in_features):
    rows, cols = out_features, in_features
    transpose = rows < cols
    shape = (cols, rows) if transpose else (rows, cols)
    a = jax.random.normal(key, shape, dtype=jnp.float32)
    q, r = jnp.linalg.qr(a)
    d = jnp.sign(jnp.diagonal(r))
    d = jnp.where(d == 0, 1.0, d)
    q = q * d[None, :]
    return q.T if transpose else q             # (out, in), torch layout


def init_raw_params(key, state_dim, action_dim, hidden_dim=256):
    in_dim = state_dim + action_dim
    shapes = [(hidden_dim, in_dim), (hidden_dim, hidden_dim), (1, hidden_dim),
              (hidden_dim, in_dim), (hidden_dim, hidden_dim), (1, hidden_dim)]
    keys = jax.random.split(key, len(shapes))
    return [(_orthogonal(k, o, i), jnp.zeros((o,), jnp.float32))
            for k, (o, i) in zip(keys, shapes)]


def pack_params(raw, hidden_dim, weight_dtype=jnp.bfloat16):
    (W1, b1), (W2, b2), (W3, b3), (W4, b4), (W5, b5), (W6, b6) = raw
    H = hidden_dim
    # fused layer-1 weight: (S+A, 2H); cols [0:H] -> Q1 head, [H:2H] -> Q2 head
    w1 = jnp.concatenate([W1.T, W4.T], axis=1).astype(weight_dtype)
    # stacked layer-2 weights
    w25 = jnp.stack([W2.T, W5.T]).astype(weight_dtype)          # (2, H, H)
    # layer-3 weights: per-head (H, 2) blocks; head 0 writes lane 0, head 1 lane 1
    w36 = jnp.zeros((2, H, 2), jnp.float32)
    w36 = w36.at[0, :, 0].set(W3[0]).at[1, :, 1].set(W6[0])
    w36 = w36.astype(weight_dtype)
    # packed biases (f32): row0 = b1||b4, row1 = b2||b5, row2[:2] = [b3, b6]
    b_all = jnp.zeros((3, 2 * H), jnp.float32)
    b_all = b_all.at[0, :H].set(b1).at[0, H:].set(b4)
    b_all = b_all.at[1, :H].set(b2).at[1, H:].set(b5)
    b_all = b_all.at[2, 0].set(b3[0]).at[2, 1].set(b6[0])
    return (w1, w25, w36, b_all)


# ---------------------------------------------------------------------------
# Pure-JAX f32 reference (original torch semantics) for correctness check.
# ---------------------------------------------------------------------------
def critic_reference(state, action, raw):
    sa = jnp.concatenate([state, action], axis=1)
    (W1, b1), (W2, b2), (W3, b3), (W4, b4), (W5, b5), (W6, b6) = raw
    h = jax.nn.relu(sa @ W1.T + b1)
    h = jax.nn.relu(h @ W2.T + b2)
    q1 = h @ W3.T + b3
    g = jax.nn.relu(sa @ W4.T + b4)
    g = jax.nn.relu(g @ W5.T + b5)
    q2 = g @ W6.T + b6
    return q1, q2


if __name__ == "__main__":
    B, STATE_DIM, ACTION_DIM, HIDDEN = 256, 24, 8, 256   # module default hidden

    key = jax.random.PRNGKey(0)
    k_state, k_action, k_params = jax.random.split(key, 3)

    state = jax.random.normal(k_state, (B, STATE_DIM), dtype=jnp.float32)
    action = jax.random.normal(k_action, (B, ACTION_DIM), dtype=jnp.float32)

    raw_params = init_raw_params(k_params, STATE_DIM, ACTION_DIM, HIDDEN)
    packed = pack_params(raw_params, HIDDEN)

    q1, q2 = critic_forward(state, action, packed)
    jax.block_until_ready((q1, q2))

    q1_ref, q2_ref = critic_reference(state, action, raw_params)
    assert q1.shape == (B, 1) and q2.shape == (B, 1)
    # bf16 weights/activations on the MXU (f32 accumulation) vs f32 reference.
    assert jnp.allclose(q1, q1_ref, atol=5e-2, rtol=5e-2)
    assert jnp.allclose(q2, q2_ref, atol=5e-2, rtol=5e-2)

    print("KERNEL_OK")
</pallas_src>

<mosaic_0001>
module attributes {stable_mosaic.version = 11 : i64} {
  func.func @_critic_kernel(%arg0: i32, %arg1: memref<256x32xbf16, #tpu.memory_space<vmem>>, %arg2: memref<32x512xbf16, #tpu.memory_space<vmem>>, %arg3: memref<2x256x256xbf16, #tpu.memory_space<vmem>>, %arg4: memref<2x256x2xbf16, #tpu.memory_space<vmem>>, %arg5: memref<3x512xf32, #tpu.memory_space<vmem>>, %arg6: memref<256x2xf32, #tpu.memory_space<vmem>>) attributes {dimension_semantics = [#tpu.dimension_semantics<parallel>], iteration_bounds = array<i64: 1>, scalar_prefetch = 0 : i64, scratch_operands = 0 : i64, tpu.core_type = #tpu.core_type<tc>, window_params = [{transform_indices = @transform_0, window_bounds = array<i64: 256, 32>}, {pipeline_mode = #tpu.pipeline_mode<synchronous>, transform_indices = @transform_1, window_bounds = array<i64: 32, 512>}, {pipeline_mode = #tpu.pipeline_mode<synchronous>, transform_indices = @transform_2, window_bounds = array<i64: 2, 256, 256>}, {pipeline_mode = #tpu.pipeline_mode<synchronous>, transform_indices = @transform_3, window_bounds = array<i64: 2, 256, 2>}, {pipeline_mode = #tpu.pipeline_mode<synchronous>, transform_indices = @transform_4, window_bounds = array<i64: 3, 512>}, {transform_indices = @transform_5, window_bounds = array<i64: 256, 2>}]} {
    %c0 = arith.constant 0 : index
    %c0_0 = arith.constant 0 : index
    %0 = vector.load %arg5[%c0, %c0_0] : memref<3x512xf32, #tpu.memory_space<vmem>>, vector<3x512xf32>
    %c0_1 = arith.constant 0 : index
    %c0_2 = arith.constant 0 : index
    %1 = vector.load %arg1[%c0_1, %c0_2] : memref<256x32xbf16, #tpu.memory_space<vmem>>, vector<256x32xbf16>
    %c0_3 = arith.constant 0 : index
    %c0_4 = arith.constant 0 : index
    %2 = vector.load %arg2[%c0_3, %c0_4] : memref<32x512xbf16, #tpu.memory_space<vmem>>, vector<32x512xbf16>
    %cst = arith.constant dense<0.000000e+00> : vector<256x512xf32>
    %3 = tpu.matmul %1, %2, %cst {dimension_numbers = #tpu.dot_dimension_numbers<[1], [0], [0], [1], [0, 0, 1, 1], [], []>} : vector<256x32xbf16>, vector<32x512xbf16>, vector<256x512xf32> -> vector<256x512xf32>
    %4 = vector.extract_strided_slice %0 {offsets = [0, 0], sizes = [1, 512], strides = [1, 1]} : vector<3x512xf32> to vector<1x512xf32>
    %5 = vector.broadcast %4 : vector<1x512xf32> to vector<256x512xf32>
    %6 = arith.addf %3, %5 : vector<256x512xf32>
    %cst_5 = arith.constant 0.000000e+00 : f32
    %7 = vector.broadcast %cst_5 : f32 to vector<256x512xf32>
    %8 = arith.maximumf %6, %7 : vector<256x512xf32>
    %9 = vector.extract_strided_slice %8 {offsets = [0, 0], sizes = [256, 256], strides = [1, 1]} : vector<256x512xf32> to vector<256x256xf32>
    %10 = arith.truncf %9 : vector<256x256xf32> to vector<256x256xbf16>
    %11 = vector.extract_strided_slice %8 {offsets = [0, 256], sizes = [256, 256], strides = [1, 1]} : vector<256x512xf32> to vector<256x256xf32>
    %12 = arith.truncf %11 : vector<256x256xf32> to vector<256x256xbf16>
    %c0_6 = arith.constant 0 : index
    %c0_7 = arith.constant 0 : index
    %c0_8 = arith.constant 0 : index
    %13 = vector.load %arg3[%c0_6, %c0_7, %c0_8] : memref<2x256x256xbf16, #tpu.memory_space<vmem>>, vector<1x256x256xbf16>
    %14 = vector.shape_cast %13 : vector<1x256x256xbf16> to vector<256x256xbf16>
    %cst_9 = arith.constant dense<0.000000e+00> : vector<256x256xf32>
    %15 = tpu.matmul %10, %14, %cst_9 {dimension_numbers = #tpu.dot_dimension_numbers<[1], [0], [0], [1], [0, 0, 1, 1], [], []>} : vector<256x256xbf16>, vector<256x256xbf16>, vector<256x256xf32> -> vector<256x256xf32>
    %16 = vector.extract_strided_slice %0 {offsets = [1, 0], sizes = [1, 256], strides = [1, 1]} : vector<3x512xf32> to vector<1x256xf32>
    %17 = vector.broadcast %16 : vector<1x256xf32> to vector<256x256xf32>
    %18 = arith.addf %15, %17 : vector<256x256xf32>
    %cst_10 = arith.constant 0.000000e+00 : f32
    %19 = vector.broadcast %cst_10 : f32 to vector<256x256xf32>
    %20 = arith.maximumf %18, %19 : vector<256x256xf32>
    %c1 = arith.constant 1 : index
    %c0_11 = arith.constant 0 : index
    %c0_12 = arith.constant 0 : index
    %21 = vector.load %arg3[%c1, %c0_11, %c0_12] : memref<2x256x256xbf16, #tpu.memory_space<vmem>>, vector<1x256x256xbf16>
    %22 = vector.shape_cast %21 : vector<1x256x256xbf16> to vector<256x256xbf16>
    %cst_13 = arith.constant dense<0.000000e+00> : vector<256x256xf32>
    %23 = tpu.matmul %12, %22, %cst_13 {dimension_numbers = #tpu.dot_dimension_numbers<[1], [0], [0], [1], [0, 0, 1, 1], [], []>} : vector<256x256xbf16>, vector<256x256xbf16>, vector<256x256xf32> -> vector<256x256xf32>
    %24 = vector.extract_strided_slice %0 {offsets = [1, 256], sizes = [1, 256], strides = [1, 1]} : vector<3x512xf32> to vector<1x256xf32>
    %25 = vector.broadcast %24 : vector<1x256xf32> to vector<256x256xf32>
    %26 = arith.addf %23, %25 : vector<256x256xf32>
    %cst_14 = arith.constant 0.000000e+00 : f32
    %27 = vector.broadcast %cst_14 : f32 to vector<256x256xf32>
    %28 = arith.maximumf %26, %27 : vector<256x256xf32>
    %29 = arith.truncf %20 : vector<256x256xf32> to vector<256x256xbf16>
    %c0_15 = arith.constant 0 : index
    %c0_16 = arith.constant 0 : index
    %c0_17 = arith.constant 0 : index
    %30 = vector.load %arg4[%c0_15, %c0_16, %c0_17] : memref<2x256x2xbf16, #tpu.memory_space<vmem>>, vector<1x256x2xbf16>
    %31 = vector.shape_cast %30 : vector<1x256x2xbf16> to vector<256x2xbf16>
    %cst_18 = arith.constant dense<0.000000e+00> : vector<256x2xf32>
    %32 = tpu.matmul %29, %31, %cst_18 {dimension_numbers = #tpu.dot_dimension_numbers<[1], [0], [0], [1], [0, 0, 1, 1], [], []>} : vector<256x256xbf16>, vector<256x2xbf16>, vector<256x2xf32> -> vector<256x2xf32>
    %33 = arith.truncf %28 : vector<256x256xf32> to vector<256x256xbf16>
    %c1_19 = arith.constant 1 : index
    %c0_20 = arith.constant 0 : index
    %c0_21 = arith.constant 0 : index
    %34 = vector.load %arg4[%c1_19, %c0_20, %c0_21] : memref<2x256x2xbf16, #tpu.memory_space<vmem>>, vector<1x256x2xbf16>
    %35 = vector.shape_cast %34 : vector<1x256x2xbf16> to vector<256x2xbf16>
    %cst_22 = arith.constant dense<0.000000e+00> : vector<256x2xf32>
    %36 = tpu.matmul %33, %35, %cst_22 {dimension_numbers = #tpu.dot_dimension_numbers<[1], [0], [0], [1], [0, 0, 1, 1], [], []>} : vector<256x256xbf16>, vector<256x2xbf16>, vector<256x2xf32> -> vector<256x2xf32>
    %37 = arith.addf %32, %36 : vector<256x2xf32>
    %38 = vector.extract_strided_slice %0 {offsets = [2, 0], sizes = [1, 2], strides = [1, 1]} : vector<3x512xf32> to vector<1x2xf32>
    %39 = vector.broadcast %38 : vector<1x2xf32> to vector<256x2xf32>
    %40 = arith.addf %37, %39 : vector<256x2xf32>
    %c0_23 = arith.constant 0 : index
    %c0_24 = arith.constant 0 : index
    %41 = vector.load %arg6[%c0_23, %c0_24] : memref<256x2xf32, #tpu.memory_space<vmem>>, vector<256x2xf32>
    tpu.vector_store %arg6[%c0_23, %c0_24], %40 {strides = array<i32>} : memref<256x2xf32, #tpu.memory_space<vmem>>, vector<256x2xf32>,
    return
  }
  func.func @transform_0(%arg0: i32) -> (i32, i32) {
    %c0_i32 = arith.constant 0 : i32
    %c0_i32_0 = arith.constant 0 : i32
    return %arg0, %c0_i32 : i32, i32
  }
  func.func @transform_1(%arg0: i32) -> (i32, i32) {
    %c0_i32 = arith.constant 0 : i32
    %c0_i32_0 = arith.constant 0 : i32
    %c0_i32_1 = arith.constant 0 : i32
    return %c0_i32, %c0_i32_0 : i32, i32
  }
  func.func @transform_2(%arg0: i32) -> (i32, i32, i32) {
    %c0_i32 = arith.constant 0 : i32
    %c0_i32_0 = arith.constant 0 : i32
    %c0_i32_1 = arith.constant 0 : i32
    %c0_i32_2 = arith.constant 0 : i32
    return %c0_i32, %c0_i32_0, %c0_i32_1 : i32, i32, i32
  }
  func.func @transform_3(%arg0: i32) -> (i32, i32, i32) {
    %c0_i32 = arith.constant 0 : i32
    %c0_i32_0 = arith.constant 0 : i32
    %c0_i32_1 = arith.constant 0 : i32
    %c0_i32_2 = arith.constant 0 : i32
    return %c0_i32, %c0_i32_0, %c0_i32_1 : i32, i32, i32
  }
  func.func @transform_4(%arg0: i32) -> (i32, i32) {
    %c0_i32 = arith.constant 0 : i32
    %c0_i32_0 = arith.constant 0 : i32
    %c0_i32_1 = arith.constant 0 : i32
    return %c0_i32, %c0_i32_0 : i32, i32
  }
  func.func @transform_5(%arg0: i32) -> (i32, i32) {
    %c0_i32 = arith.constant 0 : i32
    %c0_i32_0 = arith.constant 0 : i32
    return %arg0, %c0_i32 : i32, i32
  }
}

</mosaic_0001>

<bundles_post_ra>
// kernel: tpu_custom_call.1
= control target key start
LH: loop header
LB: loop body
LE: loop exit
PB: predicated region body
PF: predicated region fallthrough
CT: control target
= control target key end

     0   :  { %10 = vsyncpa [#allocation3], 0  ;;  %s3109_s18 = smov [#allocation2]   ;;  %s3843_s0 = inlined_call_operand.vmem [shape: bf16[256,32], index: 0, kind: input, shape index: {}]   ;;  %s3844_s1 = inlined_call_operand.vmem [shape: bf16[32,512], index: 1, kind: input, shape index: {}]   ;;  %s3845_s2 = inlined_call_operand.hbm [shape: bf16[2,256,256], index: 2, kind: input, shape index: {}]   ;;  %s3846_s3 = inlined_call_operand.vmem [shape: bf16[2,256,2], index: 3, kind: input, shape index: {}]   ;;  %s3847_s4 = inlined_call_operand.vmem [shape: f32[3,512], index: 4, kind: input, shape index: {}]   ;;  %s3848_s5 = inlined_call_operand.vmem [shape: f32[256,2], index: 5, kind: output, shape index: {}]  }
   0x1   :  { %s20_s19 = sshll.u32 %s3109_s18, 4  ;;  %s3085_s22 = scalar_lea.hbm %s3845_s2, 8192  ;;  %s21_s19 = int_to_ptr.vmem [resolvable:$true] %s20_s19 }
   0x2   :  { %p3086_p0 = scmp.ne.s32.totalorder %s3845_s2, %s3085_s22  ;;  %p3089_p1 = scmp.lt.u32.totalorder %s3085_s22, %s3845_s2 }
   0x4   :  { %p3091_p2 = pnand %p3089_p1, %p3086_p0 }
   0x6   :  { %3094 = shalt.err (!%p3091_p2)
}
   0x7   :  { %s3095_s27 = scalar_lea.vmem %s21_s19, 8192  ;;  %p3100_p4 = scmp.lt.s32.totalorder %s21_s19, %s21_s19 }
   0x8   :  { %p3096_p3 = scmp.ne.s32.totalorder %s21_s19, %s3095_s27  ;;  %p3101_p5 = scmp.lt.s32.totalorder %s3095_s27, %s3095_s27 }
   0xa   :  { %p3102_p6 = por %p3101_p5, %p3100_p4 }
   0xc   :  { %p3103_p7 = pnand %p3102_p6, %p3096_p3 }
   0xe   :  { %3106 = shalt.err (!%p3103_p7)
}
   0xf   :  { %s3110_s28 = smov 128   ;;  %s3111_s29 = smov 8  }
  0x10   :  { %26 = dma.hbm_to_vmem [thread:$0]  %s3845_s2, 8192, %s21_s19, [#allocation3], %s3110_s28, %s3110_s28, %s3111_s29  }
  0x11   :  { %3107 = dma.done.wait [#allocation3], 8192  }
  0x12   :  { %3108 = vsyncadd [#allocation3], 4294959104  ;;  %v3112_v0 = vmov 0   ;;  %v2926_v1 = vld [vmem:[%s3844_s1 + $0x4] ss:$16 sps:$4 sm:$0xff]   ;;  %vm235_vm0 = vcmask 261120  }
  0x13   :  { %316 = vmatprep.mubr.bf16.mxu0 %v3112_v0  ;;  %509 = vmatprep.mubr.bf16.mxu1 %v3112_v0  ;;  %v2928_v2 = vld [vmem:[%s3844_s1 + $0xc] ss:$16 sps:$4 sm:$0xff]   ;;  %v2930_v3 = vld [vmem:[%s3844_s1] ss:$16 sps:$4 sm:$0xff]   ;;  %v2931_v4 = vld [vmem:[%s3844_s1 + $0x8] ss:$16 sps:$4 sm:$0xff]  }
  0x14   :  { %284 = vmatprep.subr.bf16.mxu0 %v2926_v1  ;;  %477 = vmatprep.subr.bf16.mxu1 %v2928_v2  ;;  %v2932_v5 = vld [vmem:[%s3844_s1 + $0x24] ss:$16 sps:$4 sm:$0xff]   ;;  %v2934_v6 = vld [vmem:[%s3844_s1 + $0x2c] ss:$16 sps:$4 sm:$0xff]   ;;  %v2936_v7 = vld [vmem:[%s3844_s1 + $0x20] ss:$16 sps:$4 sm:$0xff]  }
  0x15   :  { %285 = vmatpush1.bf16.msra.mxu0 %v2930_v3  ;;  %478 = vmatpush1.bf16.msra.mxu1 %v2931_v4  ;;  %v2937_v8 = vld [vmem:[%s3844_s1 + $0x28] ss:$16 sps:$4 sm:$0xff]   ;;  %v2938_v9 = vld [vmem:[%s3843_s0] sm:$0xff]   ;;  %v2940_v15 = vld [vmem:[%s3843_s0 + $0x10] sm:$0xff]   ;;  %vm2476_vm1 = vcmask 15360  }
  0x16   :  { %286 = vmatprep.subr.bf16.mxu0 %v2932_v5  ;;  %479 = vmatprep.subr.bf16.mxu1 %v2934_v6  ;;  %v2939_v10 = vld [vmem:[%s3843_s0 + $0x8] sm:$0xff]   ;;  %v2957_v16 = vld [vmem:[#allocation2 + $0x10] ss:$8 sps:$4 sm:$0xff]   ;;  %v2959_v17 = vld [vmem:[#allocation2 + $0x14] ss:$8 sps:$4 sm:$0xff]  }
  0x17   :  { %v2950_v11 = vld [vmem:[#allocation2] ss:$8 sps:$4 sm:$0xff]   ;;  %v2952_v12 = vld [vmem:[#allocation2 + $0x4] ss:$8 sps:$4 sm:$0xff]   ;;  %v2960_v18 = vld [vmem:[#allocation2 + $0x110] ss:$8 sps:$4 sm:$0xff]  }
  0x18   :  { %v2953_v13 = vld [vmem:[#allocation2 + $0x100] ss:$8 sps:$4 sm:$0xff]   ;;  %v2955_v14 = vld [vmem:[#allocation2 + $0x104] ss:$8 sps:$4 sm:$0xff]   ;;  %v2962_v19 = vld [vmem:[#allocation2 + $0x114] ss:$8 sps:$4 sm:$0xff]  }
  0x19   :  { %287 = vmatpush1.bf16.msra.mxu0 %v2936_v7  ;;  %480 = vmatpush1.bf16.msra.mxu1 %v2937_v8  ;;  %v2964_v20 = vld [vmem:[#allocation2 + $0x20] ss:$8 sps:$4 sm:$0xff]   ;;  %v2966_v21 = vld [vmem:[#allocation2 + $0x24] ss:$8 sps:$4 sm:$0xff]   ;;  %v2971_v24 = vld [vmem:[#allocation2 + $0x30] ss:$8 sps:$4 sm:$0xff]  }
  0x1a   :  { %1072 = vmatprep.subr.bf16.mxu0 %v2952_v12  ;;  %1540 = vmatprep.subr.bf16.mxu1 %v2955_v14  ;;  %v2967_v22 = vld [vmem:[#allocation2 + $0x120] ss:$8 sps:$4 sm:$0xff]   ;;  %v2969_v23 = vld [vmem:[#allocation2 + $0x124] ss:$8 sps:$4 sm:$0xff]   ;;  %v2973_v25 = vld [vmem:[#allocation2 + $0x34] ss:$8 sps:$4 sm:$0xff]  }
  0x1b   :  { %v2974_v26 = vld [vmem:[#allocation2 + $0x130] ss:$8 sps:$4 sm:$0xff]   ;;  %v2976_v27 = vld [vmem:[#allocation2 + $0x134] ss:$8 sps:$4 sm:$0xff]   ;;  %v2978_v29 = vld [vmem:[#allocation2 + $0x40] ss:$8 sps:$4 sm:$0xff]  }
  0x1c   :  { %2538 = vmatmul.mubr.msk.bf16.vlgmr.msra.gmra.mrb[0].mxu0 %vm235_vm0, %v2938_v9  ;;  %2554 = vmatmul.mubr.msk.bf16.vlgmr.msra.gmra.mrb[0].mxu1 %vm235_vm0, %v2938_v9  ;;  %v2941_v28 = vld [vmem:[%s3843_s0 + $0x18] sm:$0xff]   ;;  %v2980_v30 = vld [vmem:[#allocation2 + $0x44] ss:$8 sps:$4 sm:$0xff]   ;;  %v2981_v31 = vld [vmem:[#allocation2 + $0x140] ss:$8 sps:$4 sm:$0xff]  }
  0x1d   :  { %326 = vmatprep.mubr.bf16.mxu0 %v3112_v0  ;;  %519 = vmatprep.mubr.bf16.mxu1 %v3112_v0  ;;  %v2983_v32 = vld [vmem:[#allocation2 + $0x144] ss:$8 sps:$4 sm:$0xff]   ;;  %v2986_v33 = vld [vmem:[#allocation2 + $0x54] ss:$8 sps:$4 sm:$0xff]   ;;  %v2984_v35 = vld [vmem:[#allocation2 + $0x50] ss:$8 sps:$4 sm:$0xff]  }
  0x1e   :  { %1073 = vmatpush1.bf16.msra.mxu0 %v2950_v11  ;;  %1541 = vmatpush1.bf16.msra.mxu1 %v2953_v13  ;;  %v2989_v34 = vld [vmem:[#allocation2 + $0x154] ss:$8 sps:$4 sm:$0xff]   ;;  %v2987_v36 = vld [vmem:[#allocation2 + $0x150] ss:$8 sps:$4 sm:$0xff]   ;;  %v2942_v37 = vld [vmem:[%s3843_s0 + $0x20] sm:$0xff]  }
  0x1f   :  { %1074 = vmatprep.subr.bf16.mxu0 %v2959_v17  ;;  %1542 = vmatprep.subr.bf16.mxu1 %v2962_v19  ;;  %v2992_v38 = vld [vmem:[#allocation2 + $0x64] ss:$8 sps:$4 sm:$0xff]   ;;  %v2990_v40 = vld [vmem:[#allocation2 + $0x60] ss:$8 sps:$4 sm:$0xff]   ;;  %v2998_v42 = vld [vmem:[#allocation2 + $0x74] ss:$8 sps:$4 sm:$0xff]  }
  0x20   :  { %v2995_v39 = vld [vmem:[#allocation2 + $0x164] ss:$8 sps:$4 sm:$0xff]   ;;  %v2993_v41 = vld [vmem:[#allocation2 + $0x160] ss:$8 sps:$4 sm:$0xff]   ;;  %v3001_v43 = vld [vmem:[#allocation2 + $0x174] ss:$8 sps:$4 sm:$0xff]  }
  0x21   :  { %v2996_v44 = vld [vmem:[#allocation2 + $0x70] ss:$8 sps:$4 sm:$0xff]   ;;  %v2943_v46 = vld [vmem:[%s3843_s0 + $0x28] sm:$0xff]   ;;  %v3010_v51 = vld [vmem:[#allocation2 + $0x94] ss:$8 sps:$4 sm:$0xff]  }
  0x22   :  { %1075 = vmatpush1.bf16.msra.mxu0 %v2957_v16  ;;  %1543 = vmatpush1.bf16.msra.mxu1 %v2960_v18  ;;  %v2999_v45 = vld [vmem:[#allocation2 + $0x170] ss:$8 sps:$4 sm:$0xff]   ;;  %v3004_v47 = vld [vmem:[#allocation2 + $0x84] ss:$8 sps:$4 sm:$0xff]   ;;  %v3002_v49 = vld [vmem:[#allocation2 + $0x80] ss:$8 sps:$4 sm:$0xff]  }
  0x23   :  { %1076 = vmatprep.subr.bf16.mxu0 %v2966_v21  ;;  %1544 = vmatprep.subr.bf16.mxu1 %v2969_v23  ;;  %v3007_v48 = vld [vmem:[#allocation2 + $0x184] ss:$8 sps:$4 sm:$0xff]   ;;  %v3005_v50 = vld [vmem:[#allocation2 + $0x180] ss:$8 sps:$4 sm:$0xff]   ;;  %v3013_v52 = vld [vmem:[#allocation2 + $0x194] ss:$8 sps:$4 sm:$0xff]  }
  0x24   :  { %2539 = vmatmul.mubr.msk.bf16.gmra.mrb[4].mxu0 %vm235_vm0, %v2939_v10  ;;  %2555 = vmatmul.mubr.msk.bf16.gmra.mrb[4].mxu1 %vm235_vm0, %v2939_v10  ;;  %v3008_v53 = vld [vmem:[#allocation2 + $0x90] ss:$8 sps:$4 sm:$0xff]   ;;  %v3016_v56 = vld [vmem:[#allocation2 + $0xa4] ss:$8 sps:$4 sm:$0xff]   ;;  %v3014_v58 = vld [vmem:[#allocation2 + $0xa0] ss:$8 sps:$4 sm:$0xff]  }
  0x25   :  { %336 = vmatprep.mubr.bf16.mxu0 %v3112_v0  ;;  %529 = vmatprep.mubr.bf16.mxu1 %v3112_v0  ;;  %v3011_v54 = vld [vmem:[#allocation2 + $0x190] ss:$8 sps:$4 sm:$0xff]   ;;  %v3019_v57 = vld [vmem:[#allocation2 + $0x1a4] ss:$8 sps:$4 sm:$0xff]   ;;  %v3017_v59 = vld [vmem:[#allocation2 + $0x1a0] ss:$8 sps:$4 sm:$0xff]  }
  0x26   :  { %1077 = vmatpush1.bf16.msra.mxu0 %v2964_v20  ;;  %1545 = vmatpush1.bf16.msra.mxu1 %v2967_v22  ;;  %v2944_v55 = vld [vmem:[%s3843_s0 + $0x30] sm:$0xff]   ;;  %v2945_v62 = vld [vmem:[%s3843_s0 + $0x38] sm:$0xff]   ;;  %v3028_v2 = vld [vmem:[#allocation2 + $0xc4] ss:$8 sps:$4 sm:$0xff]  }
  0x27   :  { %1078 = vmatprep.subr.bf16.mxu0 %v2973_v25  ;;  %1546 = vmatprep.subr.bf16.mxu1 %v2976_v27  ;;  %v3022_v60 = vld [vmem:[#allocation2 + $0xb4] ss:$8 sps:$4 sm:$0xff]   ;;  %v3020_v63 = vld [vmem:[#allocation2 + $0xb0] ss:$8 sps:$4 sm:$0xff]   ;;  %v3031_v3 = vld [vmem:[#allocation2 + $0x1c4] ss:$8 sps:$4 sm:$0xff]  }
  0x28   :  { %v3025_v61 = vld [vmem:[#allocation2 + $0x1b4] ss:$8 sps:$4 sm:$0xff]   ;;  %v3023_v1 = vld [vmem:[#allocation2 + $0x1b0] ss:$8 sps:$4 sm:$0xff]   ;;  %v3026_v4 = vld [vmem:[#allocation2 + $0xc0] ss:$8 sps:$4 sm:$0xff]  }
  0x29   :  { %v3029_v5 = vld [vmem:[#allocation2 + $0x1c0] ss:$8 sps:$4 sm:$0xff]   ;;  %v3034_v6 = vld [vmem:[#allocation2 + $0xd4] ss:$8 sps:$4 sm:$0xff]   ;;  %v3032_v8 = vld [vmem:[#allocation2 + $0xd0] ss:$8 sps:$4 sm:$0xff]  }
  0x2a   :  { %1079 = vmatpush1.bf16.msra.mxu0 %v2971_v24  ;;  %1547 = vmatpush1.bf16.msra.mxu1 %v2974_v26  ;;  %v3037_v7 = vld [vmem:[#allocation2 + $0x1d4] ss:$8 sps:$4 sm:$0xff]   ;;  %v3035_v9 = vld [vmem:[#allocation2 + $0x1d0] ss:$8 sps:$4 sm:$0xff]   ;;  %v2946_v10 = vld [vmem:[%s3843_s0 + $0x40] sm:$0xff]  }
  0x2b   :  { %1080 = vmatprep.subr.bf16.mxu0 %v2980_v30  ;;  %1548 = vmatprep.subr.bf16.mxu1 %v2983_v32  ;;  %v3040_v11 = vld [vmem:[#allocation2 + $0xe4] ss:$8 sps:$4 sm:$0xff]   ;;  %v3038_v13 = vld [vmem:[#allocation2 + $0xe0] ss:$8 sps:$4 sm:$0xff]   ;;  %v2948_v16 = vld [vmem:[%s3843_s0 + $0x50] sm:$0xff]  }
  0x2c   :  { %2540 = vmatmul.mubr.msk.bf16.gmra.mrb[8].mxu0 %vm235_vm0, %v2940_v15  ;;  %2556 = vmatmul.mubr.msk.bf16.gmra.mrb[8].mxu1 %vm235_vm0, %v2940_v15  ;;  %v3043_v12 = vld [vmem:[#allocation2 + $0x1e4] ss:$8 sps:$4 sm:$0xff]   ;;  %v3041_v14 = vld [vmem:[#allocation2 + $0x1e0] ss:$8 sps:$4 sm:$0xff]   ;;  %v2949_v17 = vld [vmem:[%s3843_s0 + $0x58] sm:$0xff]  }
  0x2d   :  { %346 = vmatprep.mubr.bf16.mxu0 %v3112_v0  ;;  %539 = vmatprep.mubr.bf16.mxu1 %v3112_v0  ;;  %v2947_v15 = vld [vmem:[%s3843_s0 + $0x48] sm:$0xff]   ;;  %v3046_v18 = vld [vmem:[#allocation2 + $0xf4] ss:$8 sps:$4 sm:$0xff]   ;;  %v3044_v20 = vld [vmem:[#allocation2 + $0xf0] ss:$8 sps:$4 sm:$0xff]  }
  0x2e   :  { %1081 = vmatpush1.bf16.msra.mxu0 %v2978_v29  ;;  %1549 = vmatpush1.bf16.msra.mxu1 %v2981_v31  ;;  %v3049_v19 = vld [vmem:[#allocation2 + $0x1f4] ss:$8 sps:$4 sm:$0xff]   ;;  %v3047_v21 = vld [vmem:[#allocation2 + $0x1f0] ss:$8 sps:$4 sm:$0xff]   ;;  %v2956_v22 = vld [vmem:[%s3843_s0 + $0x60] sm:$0xff]  }
  0x2f   :  { %1082 = vmatprep.subr.bf16.mxu0 %v2986_v33  ;;  %1550 = vmatprep.subr.bf16.mxu1 %v2989_v34  ;;  %v2963_v23 = vld [vmem:[%s3843_s0 + $0x68] sm:$0xff]   ;;  %v2970_v24 = vld [vmem:[%s3843_s0 + $0x70] sm:$0xff]   ;;  %v2977_v25 = vld [vmem:[%s3843_s0 + $0x78] sm:$0xff]  }
  0x30   :  { %v3050_v26 = vld [vmem:[%s3846_s3 + $0xc0] sm:$0xff]   ;;  %v36_v31 = vld [vmem:[%s3847_s4 + $0x8] sm:$0x77] }
  0x31   :  { %v3051_v27 = vld [vmem:[%s3846_s3 + $0x40] sm:$0xff]  }
  0x32   :  { %1083 = vmatpush1.bf16.msra.mxu0 %v2984_v35  ;;  %1551 = vmatpush1.bf16.msra.mxu1 %v2987_v36  ;;  %v35_v30 = vld [vmem:[%s3847_s4] sm:$0x77] }
  0x33   :  { %1084 = vmatprep.subr.bf16.mxu0 %v2992_v38  ;;  %1552 = vmatprep.subr.bf16.mxu1 %v2995_v39 }
  0x34   :  { %2541 = vmatmul.mubr.msk.bf16.gmra.mrb[12].mxu0 %vm235_vm0, %v2941_v28  ;;  %2557 = vmatmul.mubr.msk.bf16.gmra.mrb[12].mxu1 %vm235_vm0, %v2941_v28  ;;  %v79_v28 = vlaneseq }
  0x35   :  { %356 = vmatprep.mubr.bf16.mxu0 %v3112_v0  ;;  %549 = vmatprep.mubr.bf16.mxu1 %v3112_v0 }
  0x36   :  { %1085 = vmatpush1.bf16.msra.mxu0 %v2990_v40  ;;  %1553 = vmatpush1.bf16.msra.mxu1 %v2993_v41 }
  0x37   :  { %1086 = vmatprep.subr.bf16.mxu0 %v2998_v42  ;;  %1554 = vmatprep.subr.bf16.mxu1 %v3001_v43 }
  0x3a   :  { %1087 = vmatpush1.bf16.msra.mxu0 %v2996_v44  ;;  %1555 = vmatpush1.bf16.msra.mxu1 %v2999_v45 }
  0x3b   :  { %1088 = vmatprep.subr.bf16.mxu0 %v3004_v47  ;;  %1556 = vmatprep.subr.bf16.mxu1 %v3007_v48 }
  0x3c   :  { %2542 = vmatmul.mubr.msk.bf16.gmra.mrb[16].mxu0 %vm235_vm0, %v2942_v37  ;;  %2558 = vmatmul.mubr.msk.bf16.gmra.mrb[16].mxu1 %vm235_vm0, %v2942_v37 }
  0x3d   :  { %366 = vmatprep.mubr.bf16.mxu0 %v3112_v0  ;;  %559 = vmatprep.mubr.bf16.mxu1 %v3112_v0 }
  0x3e   :  { %1089 = vmatpush1.bf16.msra.mxu0 %v3002_v49  ;;  %1557 = vmatpush1.bf16.msra.mxu1 %v3005_v50 }
  0x3f   :  { %1090 = vmatprep.subr.bf16.mxu0 %v3010_v51  ;;  %1558 = vmatprep.subr.bf16.mxu1 %v3013_v52 }
  0x42   :  { %1091 = vmatpush1.bf16.msra.mxu0 %v3008_v53  ;;  %1559 = vmatpush1.bf16.msra.mxu1 %v3011_v54 }
  0x43   :  { %1092 = vmatprep.subr.bf16.mxu0 %v3016_v56  ;;  %1560 = vmatprep.subr.bf16.mxu1 %v3019_v57 }
  0x44   :  { %2543 = vmatmul.mubr.msk.bf16.gmra.mrb[20].mxu0 %vm235_vm0, %v2943_v46  ;;  %2559 = vmatmul.mubr.msk.bf16.gmra.mrb[20].mxu1 %vm235_vm0, %v2943_v46 }
  0x45   :  { %376 = vmatprep.mubr.bf16.mxu0 %v3112_v0  ;;  %569 = vmatprep.mubr.bf16.mxu1 %v3112_v0 }
  0x46   :  { %1093 = vmatpush1.bf16.msra.mxu0 %v3014_v58  ;;  %1561 = vmatpush1.bf16.msra.mxu1 %v3017_v59 }
  0x47   :  { %1094 = vmatprep.subr.bf16.mxu0 %v3022_v60  ;;  %1562 = vmatprep.subr.bf16.mxu1 %v3025_v61 }
  0x4a   :  { %1095 = vmatpush1.bf16.msra.mxu0 %v3020_v63  ;;  %1563 = vmatpush1.bf16.msra.mxu1 %v3023_v1 }
  0x4b   :  { %1096 = vmatprep.subr.bf16.mxu0 %v3028_v2  ;;  %1564 = vmatprep.subr.bf16.mxu1 %v3031_v3 }
  0x4c   :  { %2544 = vmatmul.mubr.msk.bf16.gmra.mrb[24].mxu0 %vm235_vm0, %v2944_v55  ;;  %2560 = vmatmul.mubr.msk.bf16.gmra.mrb[24].mxu1 %vm235_vm0, %v2944_v55 }
  0x4d   :  { %386 = vmatprep.mubr.bf16.mxu0 %v3112_v0  ;;  %579 = vmatprep.mubr.bf16.mxu1 %v3112_v0 }
  0x4e   :  { %1097 = vmatpush1.bf16.msra.mxu0 %v3026_v4  ;;  %1565 = vmatpush1.bf16.msra.mxu1 %v3029_v5 }
  0x4f   :  { %1098 = vmatprep.subr.bf16.mxu0 %v3034_v6  ;;  %1566 = vmatprep.subr.bf16.mxu1 %v3037_v7 }
  0x52   :  { %1099 = vmatpush1.bf16.msra.mxu0 %v3032_v8  ;;  %1567 = vmatpush1.bf16.msra.mxu1 %v3035_v9  ;;  %v3052_v8 = vld [vmem:[%s3846_s3 + $0x80] sm:$0xff]  }
  0x53   :  { %1100 = vmatprep.subr.bf16.mxu0 %v3040_v11  ;;  %1568 = vmatprep.subr.bf16.mxu1 %v3043_v12  ;;  %v3053_v9 = vld [vmem:[%s3846_s3] sm:$0xff]  }
  0x54   :  { %2545 = vmatmul.mubr.msk.bf16.gmra.mrb[28].mxu0 %vm235_vm0, %v2945_v62  ;;  %2561 = vmatmul.mubr.msk.bf16.gmra.mrb[28].mxu1 %vm235_vm0, %v2945_v62 }
  0x55   :  { %396 = vmatprep.mubr.bf16.mxu0 %v3112_v0  ;;  %589 = vmatprep.mubr.bf16.mxu1 %v3112_v0 }
  0x56   :  { %1101 = vmatpush1.bf16.msra.mxu0 %v3038_v13  ;;  %1569 = vmatpush1.bf16.msra.mxu1 %v3041_v14  ;;  %v3054_v14 = vld [vmem:[%s3846_s3 + $0xc8] sm:$0xff]  }
  0x57   :  { %1102 = vmatprep.subr.bf16.mxu0 %v3046_v18  ;;  %1570 = vmatprep.subr.bf16.mxu1 %v3049_v19 }
  0x5a   :  { %1103 = vmatpush1.bf16.msra.mxu0 %v3044_v20  ;;  %1571 = vmatpush1.bf16.msra.mxu1 %v3047_v21 }
  0x5b   :  { %2698 = vmatprep.subr.bf16.mxu0 %v3050_v26  ;;  %2810 = vmatprep.subr.bf16.mxu1 %v3051_v27  ;;  %v3056_v26 = vld [vmem:[%s3846_s3 + $0x88] sm:$0xff]  }
  0x5c   :  { %2546 = vmatmul.mubr.msk.bf16.gmra.mrb[32].mxu0 %vm235_vm0, %v2946_v10  ;;  %2562 = vmatmul.mubr.msk.bf16.gmra.mrb[32].mxu1 %vm235_vm0, %v2946_v10  ;;  %v3057_v27 = vld [vmem:[%s3846_s3 + $0x8] sm:$0xff]  }
  0x5d   :  { %406 = vmatprep.mubr.bf16.mxu0 %v3112_v0  ;;  %599 = vmatprep.mubr.bf16.mxu1 %v3112_v0 }
  0x64   :  { %2547 = vmatmul.mubr.msk.bf16.gmra.mrb[36].mxu0 %vm235_vm0, %v2947_v15  ;;  %2563 = vmatmul.mubr.msk.bf16.gmra.mrb[36].mxu1 %vm235_vm0, %v2947_v15  ;;  %v3055_v15 = vld [vmem:[%s3846_s3 + $0x48] sm:$0xff]  }
  0x65   :  { %416 = vmatprep.mubr.bf16.mxu0 %v3112_v0  ;;  %609 = vmatprep.mubr.bf16.mxu1 %v3112_v0 }
  0x6c   :  { %2548 = vmatmul.mubr.msk.bf16.gmra.mrb[40].mxu0 %vm235_vm0, %v2948_v16  ;;  %2564 = vmatmul.mubr.msk.bf16.gmra.mrb[40].mxu1 %vm235_vm0, %v2948_v16 }
  0x6d   :  { %426 = vmatprep.mubr.bf16.mxu0 %v3112_v0  ;;  %619 = vmatprep.mubr.bf16.mxu1 %v3112_v0 }
  0x74   :  { %2549 = vmatmul.mubr.msk.bf16.gmra.mrb[44].mxu0 %vm235_vm0, %v2949_v17  ;;  %2565 = vmatmul.mubr.msk.bf16.gmra.mrb[44].mxu1 %vm235_vm0, %v2949_v17 }
  0x75   :  { %436 = vmatprep.mubr.bf16.mxu0 %v3112_v0  ;;  %629 = vmatprep.mubr.bf16.mxu1 %v3112_v0 }
  0x7c   :  { %2550 = vmatmul.mubr.msk.bf16.gmra.mrb[48].mxu0 %vm235_vm0, %v2956_v22  ;;  %2566 = vmatmul.mubr.msk.bf16.gmra.mrb[48].mxu1 %vm235_vm0, %v2956_v22 }
  0x7d   :  { %446 = vmatprep.mubr.bf16.mxu0 %v3112_v0  ;;  %639 = vmatprep.mubr.bf16.mxu1 %v3112_v0 }
  0x84   :  { %2551 = vmatmul.mubr.msk.bf16.gmra.mrb[52].mxu0 %vm235_vm0, %v2963_v23  ;;  %2567 = vmatmul.mubr.msk.bf16.gmra.mrb[52].mxu1 %vm235_vm0, %v2963_v23 }
  0x85   :  { %456 = vmatprep.mubr.bf16.mxu0 %v3112_v0  ;;  %649 = vmatprep.mubr.bf16.mxu1 %v3112_v0 }
  0x8c   :  { %2552 = vmatmul.mubr.msk.bf16.gmra.mrb[56].mxu0 %vm235_vm0, %v2970_v24  ;;  %2568 = vmatmul.mubr.msk.bf16.gmra.mrb[56].mxu1 %vm235_vm0, %v2970_v24 }
  0x8d   :  { %466 = vmatprep.mubr.bf16.mxu0 %v3112_v0  ;;  %659 = vmatprep.mubr.bf16.mxu1 %v3112_v0  ;;  %v3297_v0 = vshrl.u32 %v79_v28, 7 }
  0x8f   :  { %v81_v29 = vsub.s32 0, %v3297_v0  ;;  %v85_v32 = vsub.s32 4, %v3297_v0 }
  0x91   :  { %v82_v33 = vrot.slane %v35_v30, %v81_v29  ;;  %v90_v34 = vrot.slane %v36_v31, %v81_v29  ;;  %v86_v35 = vrot.slane %v35_v30, %v85_v32  ;;  %v94_v36 = vrot.slane %v36_v31, %v85_v32  ;;  %v3058_v32 = vld [vmem:[%s3846_s3 + $0xd0] sm:$0xff]  }
  0x93   :  { %v3307_v37 = vrot.slane %v82_v33, %v81_v29  ;;  %v3309_v38 = vrot.slane %v90_v34, %v81_v29  ;;  %v3311_v39 = vrot.slane %v86_v35, %v81_v29  ;;  %v3313_v40 = vrot.slane %v94_v36, %v81_v29  ;;  %v3059_v33 = vld [vmem:[%s3846_s3 + $0x50] sm:$0xff]  }
  0x94   :  { %2553 = vmatmul.mubr.msk.bf16.gmra.mrb[60].mxu0 %vm235_vm0, %v2977_v25  ;;  %2569 = vmatmul.mubr.msk.bf16.gmra.mrb[60].mxu1 %vm235_vm0, %v2977_v25 }
  0xef   :  { %v318_v41 = vpop.f32.mrb[0].mxu0  ;;  %v511_v42 = vpop.f32.mrb[0].mxu1 }
  0xf0   :  { %v319_v43 = vadd.f32 %v318_v41, %v3307_v37  ;;  %v512_v44 = vadd.f32 %v511_v42, %v3309_v38  ;;  %v320_v45 = vpop.f32.mrb[1].mxu0  ;;  %v513_v46 = vpop.f32.mrb[1].mxu1 }
  0xf1   :  { %v321_v47 = vadd.f32 %v320_v45, %v3311_v39  ;;  %v514_v48 = vadd.f32 %v513_v46, %v3313_v40  ;;  %v322_v49 = vpop.f32.mrb[2].mxu0  ;;  %v515_v50 = vpop.f32.mrb[2].mxu1 }
  0xf2   :  { %v323_v51 = vadd.f32 %v322_v49, %v3307_v37  ;;  %v516_v52 = vadd.f32 %v515_v50, %v3309_v38  ;;  %v324_v53 = vpop.f32.mrb[3].mxu0  ;;  %v517_v54 = vpop.f32.mrb[3].mxu1  ;;  %v670_v57 = vmax.f32 %v319_v43, 0.0  ;;  %v672_v58 = vmax.f32 %v512_v44, 0.0  ;;  %v3061_v49 = vld [vmem:[%s3846_s3 + $0x10] sm:$0xff]  }
  0xf3   :  { %v325_v55 = vadd.f32 %v324_v53, %v3311_v39  ;;  %v518_v56 = vadd.f32 %v517_v54, %v3313_v40  ;;  %v671_v61 = vmax.f32 %v321_v47, 0.0  ;;  %v673_v62 = vmax.f32 %v514_v48, 0.0  ;;  %v3060_v48 = vld [vmem:[%s3846_s3 + $0x90] sm:$0xff]   ;;  %v3062_v54 = vld [vmem:[%s3846_s3 + $0xd8] sm:$0xff]  }
  0xf4   :  { %v674_v59 = vmax.f32 %v323_v51, 0.0  ;;  %v676_v60 = vmax.f32 %v516_v52, 0.0 }
  0xf5   :  { %v675_v63 = vmax.f32 %v325_v55, 0.0  ;;  %v677_v1 = vmax.f32 %v518_v56, 0.0  ;;  %v3063_v55 = vld [vmem:[%s3846_s3 + $0x58] sm:$0xff]  }
  0xf6   :  { %v798_v2 = vpack.c.bf16 %v674_v59, %v670_v57  ;;  %v830_v3 = vpack.c.bf16 %v676_v60, %v672_v58 }
  0xf7   :  { %v799_v4 = vpack.c.bf16 %v675_v63, %v671_v61  ;;  %v831_v5 = vpack.c.bf16 %v677_v1, %v673_v62  ;;  %v328_v6 = vpop.f32.mrb[4].mxu0  ;;  %v521_v7 = vpop.f32.mrb[4].mxu1 }
  0xf8   :  { %v329_v10 = vadd.f32 %v328_v6, %v3307_v37  ;;  %v522_v11 = vadd.f32 %v521_v7, %v3309_v38  ;;  %v330_v12 = vpop.f32.mrb[5].mxu0  ;;  %v523_v13 = vpop.f32.mrb[5].mxu1 }
  0xf9   :  { %v331_v16 = vadd.f32 %v330_v12, %v3311_v39  ;;  %v524_v17 = vadd.f32 %v523_v13, %v3313_v40  ;;  %v332_v18 = vpop.f32.mrb[6].mxu0  ;;  %v525_v19 = vpop.f32.mrb[6].mxu1  ;;  %1104 = vmatprep.mubr.bf16.mxu0 %v799_v4  ;;  %1572 = vmatprep.mubr.bf16.mxu1 %v831_v5  ;;  %v3065_v4 = vld [vmem:[%s3846_s3 + $0x18] sm:$0xff]  }
  0xfa   :  { %v333_v20 = vadd.f32 %v332_v18, %v3307_v37  ;;  %v526_v21 = vadd.f32 %v525_v19, %v3309_v38  ;;  %v334_v22 = vpop.f32.mrb[7].mxu0  ;;  %v527_v23 = vpop.f32.mrb[7].mxu1  ;;  %1105 = vmatmul.mubr.bf16.vlgmr.msra.gmra.mrb[64].mxu0 %v798_v2  ;;  %1573 = vmatmul.mubr.bf16.vlgmr.msra.gmra.mrb[64].mxu1 %v830_v3  ;;  %v678_v28 = vmax.f32 %v329_v10, 0.0  ;;  %v680_v29 = vmax.f32 %v522_v11, 0.0  ;;  %v3064_v3 = vld [vmem:[%s3846_s3 + $0x98] sm:$0xff]   ;;  %v3067_v10 = vld [vmem:[%s3846_s3 + $0x60] sm:$0xff]  }
  0xfb   :  { %v335_v24 = vadd.f32 %v334_v22, %v3311_v39  ;;  %v528_v25 = vadd.f32 %v527_v23, %v3313_v40  ;;  %2699 = vmatpush3.bf16.msra.mxu0 %v3052_v8  ;;  %2811 = vmatpush3.bf16.msra.mxu1 %v3053_v9  ;;  %v679_v34 = vmax.f32 %v331_v16, 0.0  ;;  %v681_v35 = vmax.f32 %v524_v17, 0.0  ;;  %v3066_v9 = vld [vmem:[%s3846_s3 + $0xe0] sm:$0xff]  }
  0xfc   :  { %v682_v30 = vmax.f32 %v333_v20, 0.0  ;;  %v684_v31 = vmax.f32 %v526_v21, 0.0  ;;  %2700 = vmatprep.subr.bf16.mxu0 %v3054_v14  ;;  %2812 = vmatprep.subr.bf16.mxu1 %v3055_v15  ;;  %v3068_v21 = vld [vmem:[%s3846_s3 + $0xa0] sm:$0xff]  }
  0xfd   :  { %v683_v36 = vmax.f32 %v335_v24, 0.0  ;;  %v685_v41 = vmax.f32 %v528_v25, 0.0  ;;  %v3069_v22 = vld [vmem:[%s3846_s3 + $0x20] sm:$0xff]  }
  0xfe   :  { %v800_v42 = vpack.c.bf16 %v682_v30, %v678_v28  ;;  %v832_v43 = vpack.c.bf16 %v684_v31, %v680_v29  ;;  %v3071_v28 = vld [vmem:[%s3846_s3 + $0x68] sm:$0xff]  }
  0xff   :  { %v801_v44 = vpack.c.bf16 %v683_v36, %v679_v34  ;;  %v833_v45 = vpack.c.bf16 %v685_v41, %v681_v35  ;;  %v338_v46 = vpop.f32.mrb[8].mxu0  ;;  %v531_v47 = vpop.f32.mrb[8].mxu1  ;;  %2701 = vmatpush3.bf16.msra.mxu0 %v3056_v26  ;;  %2813 = vmatpush3.bf16.msra.mxu1 %v3057_v27  ;;  %v3070_v27 = vld [vmem:[%s3846_s3 + $0xe8] sm:$0xff]  }
 0x100   :  { %v339_v50 = vadd.f32 %v338_v46, %v3307_v37  ;;  %v532_v51 = vadd.f32 %v531_v47, %v3309_v38  ;;  %v340_v52 = vpop.f32.mrb[9].mxu0  ;;  %v533_v53 = vpop.f32.mrb[9].mxu1  ;;  %2702 = vmatprep.subr.bf16.mxu0 %v3058_v32  ;;  %2814 = vmatprep.subr.bf16.mxu1 %v3059_v33 }
 0x101   :  { %v341_v56 = vadd.f32 %v340_v52, %v3311_v39  ;;  %v534_v57 = vadd.f32 %v533_v53, %v3313_v40  ;;  %v342_v58 = vpop.f32.mrb[10].mxu0  ;;  %v535_v59 = vpop.f32.mrb[10].mxu1  ;;  %1114 = vmatprep.mubr.bf16.mxu0 %v801_v44  ;;  %1582 = vmatprep.mubr.bf16.mxu1 %v833_v45  ;;  %v3073_v44 = vld [vmem:[%s3846_s3 + $0x28] sm:$0xff]  }
 0x102   :  { %v343_v60 = vadd.f32 %v342_v58, %v3307_v37  ;;  %v536_v61 = vadd.f32 %v535_v59, %v3309_v38  ;;  %v344_v62 = vpop.f32.mrb[11].mxu0  ;;  %v537_v63 = vpop.f32.mrb[11].mxu1  ;;  %1115 = vmatmul.mubr.bf16.gmra.mrb[68].mxu0 %v800_v42  ;;  %1583 = vmatmul.mubr.bf16.gmra.mrb[68].mxu1 %v832_v43  ;;  %v686_v5 = vmax.f32 %v339_v50, 0.0  ;;  %v688_v6 = vmax.f32 %v532_v51, 0.0  ;;  %v3072_v43 = vld [vmem:[%s3846_s3 + $0xa8] sm:$0xff]   ;;  %v3075_v50 = vld [vmem:[%s3846_s3 + $0x70] sm:$0xff]  }
 0x103   :  { %v345_v1 = vadd.f32 %v344_v62, %v3311_v39  ;;  %v538_v2 = vadd.f32 %v537_v63, %v3313_v40  ;;  %2703 = vmatpush3.bf16.msra.mxu0 %v3060_v48  ;;  %2815 = vmatpush3.bf16.msra.mxu1 %v3061_v49  ;;  %v687_v11 = vmax.f32 %v341_v56, 0.0  ;;  %v689_v12 = vmax.f32 %v534_v57, 0.0  ;;  %v3074_v49 = vld [vmem:[%s3846_s3 + $0xf0] sm:$0xff]  }
 0x104   :  { %v690_v7 = vmax.f32 %v343_v60, 0.0  ;;  %v692_v8 = vmax.f32 %v536_v61, 0.0  ;;  %2704 = vmatprep.subr.bf16.mxu0 %v3062_v54  ;;  %2816 = vmatprep.subr.bf16.mxu1 %v3063_v55  ;;  %v3076_v61 = vld [vmem:[%s3846_s3 + $0xb0] sm:$0xff]  }
 0x105   :  { %v691_v13 = vmax.f32 %v345_v1, 0.0  ;;  %v693_v14 = vmax.f32 %v538_v2, 0.0  ;;  %v3077_v62 = vld [vmem:[%s3846_s3 + $0x30] sm:$0xff]  }
 0x106   :  { %v802_v15 = vpack.c.bf16 %v690_v7, %v686_v5  ;;  %v834_v16 = vpack.c.bf16 %v692_v8, %v688_v6  ;;  %v3079_v5 = vld [vmem:[%s3846_s3 + $0x78] sm:$0xff]  }
 0x107   :  { %v803_v17 = vpack.c.bf16 %v691_v13, %v687_v11  ;;  %v835_v18 = vpack.c.bf16 %v693_v14, %v689_v12  ;;  %v348_v19 = vpop.f32.mrb[12].mxu0  ;;  %v541_v20 = vpop.f32.mrb[12].mxu1  ;;  %2705 = vmatpush3.bf16.msra.mxu0 %v3064_v3  ;;  %2817 = vmatpush3.bf16.msra.mxu1 %v3065_v4  ;;  %v3078_v4 = vld [vmem:[%s3846_s3 + $0xf8] sm:$0xff]  }
 0x108   :  { %v349_v23 = vadd.f32 %v348_v19, %v3307_v37  ;;  %v542_v24 = vadd.f32 %v541_v20, %v3309_v38  ;;  %v350_v25 = vpop.f32.mrb[13].mxu0  ;;  %v543_v26 = vpop.f32.mrb[13].mxu1  ;;  %2706 = vmatprep.subr.bf16.mxu0 %v3066_v9  ;;  %2818 = vmatprep.subr.bf16.mxu1 %v3067_v10 }
 0x109   :  { %v351_v29 = vadd.f32 %v350_v25, %v3311_v39  ;;  %v544_v30 = vadd.f32 %v543_v26, %v3313_v40  ;;  %v352_v31 = vpop.f32.mrb[14].mxu0  ;;  %v545_v32 = vpop.f32.mrb[14].mxu1  ;;  %1124 = vmatprep.mubr.bf16.mxu0 %v803_v17  ;;  %1592 = vmatprep.mubr.bf16.mxu1 %v835_v18  ;;  %v3081_v17 = vld [vmem:[%s3846_s3 + $0x38] sm:$0xff]  }
 0x10a   :  { %v353_v33 = vadd.f32 %v352_v31, %v3307_v37  ;;  %v546_v34 = vadd.f32 %v545_v32, %v3309_v38  ;;  %v354_v35 = vpop.f32.mrb[15].mxu0  ;;  %v547_v36 = vpop.f32.mrb[15].mxu1  ;;  %1125 = vmatmul.mubr.bf16.gmra.mrb[72].mxu0 %v802_v15  ;;  %1593 = vmatmul.mubr.bf16.gmra.mrb[72].mxu1 %v834_v16  ;;  %v694_v45 = vmax.f32 %v349_v23, 0.0  ;;  %v696_v46 = vmax.f32 %v542_v24, 0.0  ;;  %v3080_v16 = vld [vmem:[%s3846_s3 + $0xb8] sm:$0xff]  }
 0x10b   :  { %v355_v41 = vadd.f32 %v354_v35, %v3311_v39  ;;  %v548_v42 = vadd.f32 %v547_v36, %v3313_v40  ;;  %2707 = vmatpush3.bf16.msra.mxu0 %v3068_v21  ;;  %2819 = vmatpush3.bf16.msra.mxu1 %v3069_v22  ;;  %v695_v51 = vmax.f32 %v351_v29, 0.0  ;;  %v697_v52 = vmax.f32 %v544_v30, 0.0 }
 0x10c   :  { %v698_v47 = vmax.f32 %v353_v33, 0.0  ;;  %v700_v48 = vmax.f32 %v546_v34, 0.0  ;;  %2708 = vmatprep.subr.bf16.mxu0 %v3070_v27  ;;  %2820 = vmatprep.subr.bf16.mxu1 %v3071_v28 }
 0x10d   :  { %v699_v53 = vmax.f32 %v355_v41, 0.0  ;;  %v701_v54 = vmax.f32 %v548_v42, 0.0 }
 0x10e   :  { %v804_v55 = vpack.c.bf16 %v698_v47, %v694_v45  ;;  %v836_v56 = vpack.c.bf16 %v700_v48, %v696_v46 }
 0x10f   :  { %v805_v57 = vpack.c.bf16 %v699_v53, %v695_v51  ;;  %v837_v58 = vpack.c.bf16 %v701_v54, %v697_v52  ;;  %v358_v59 = vpop.f32.mrb[16].mxu0  ;;  %v551_v60 = vpop.f32.mrb[16].mxu1  ;;  %2709 = vmatpush3.bf16.msra.mxu0 %v3072_v43  ;;  %2821 = vmatpush3.bf16.msra.mxu1 %v3073_v44 }
 0x110   :  { %v359_v63 = vadd.f32 %v358_v59, %v3307_v37  ;;  %v552_v1 = vadd.f32 %v551_v60, %v3309_v38  ;;  %v360_v2 = vpop.f32.mrb[17].mxu0  ;;  %v553_v3 = vpop.f32.mrb[17].mxu1  ;;  %2710 = vmatprep.subr.bf16.mxu0 %v3074_v49  ;;  %2822 = vmatprep.subr.bf16.mxu1 %v3075_v50 }
 0x111   :  { %v361_v6 = vadd.f32 %v360_v2, %v3311_v39  ;;  %v554_v7 = vadd.f32 %v553_v3, %v3313_v40  ;;  %v362_v8 = vpop.f32.mrb[18].mxu0  ;;  %v555_v9 = vpop.f32.mrb[18].mxu1  ;;  %1134 = vmatprep.mubr.bf16.mxu0 %v805_v57  ;;  %1602 = vmatprep.mubr.bf16.mxu1 %v837_v58 }
 0x112   :  { %v363_v10 = vadd.f32 %v362_v8, %v3307_v37  ;;  %v556_v11 = vadd.f32 %v555_v9, %v3309_v38  ;;  %v364_v12 = vpop.f32.mrb[19].mxu0  ;;  %v557_v13 = vpop.f32.mrb[19].mxu1  ;;  %1135 = vmatmul.mubr.bf16.gmra.mrb[76].mxu0 %v804_v55  ;;  %1603 = vmatmul.mubr.bf16.gmra.mrb[76].mxu1 %v836_v56  ;;  %v702_v18 = vmax.f32 %v359_v63, 0.0  ;;  %v704_v19 = vmax.f32 %v552_v1, 0.0 }
 0x113   :  { %v365_v14 = vadd.f32 %v364_v12, %v3311_v39  ;;  %v558_v15 = vadd.f32 %v557_v13, %v3313_v40  ;;  %2711 = vmatpush3.bf16.msra.mxu0 %v3076_v61  ;;  %2823 = vmatpush3.bf16.msra.mxu1 %v3077_v62  ;;  %v703_v22 = vmax.f32 %v361_v6, 0.0  ;;  %v705_v23 = vmax.f32 %v554_v7, 0.0 }
 0x114   :  { %v706_v20 = vmax.f32 %v363_v10, 0.0  ;;  %v708_v21 = vmax.f32 %v556_v11, 0.0  ;;  %2712 = vmatprep.subr.bf16.mxu0 %v3078_v4  ;;  %2824 = vmatprep.subr.bf16.mxu1 %v3079_v5 }
 0x115   :  { %v707_v24 = vmax.f32 %v365_v14, 0.0  ;;  %v709_v25 = vmax.f32 %v558_v15, 0.0 }
 0x116   :  { %v806_v26 = vpack.c.bf16 %v706_v20, %v702_v18  ;;  %v838_v27 = vpack.c.bf16 %v708_v21, %v704_v19 }
 0x117   :  { %v807_v28 = vpack.c.bf16 %v707_v24, %v703_v22  ;;  %v839_v29 = vpack.c.bf16 %v709_v25, %v705_v23  ;;  %v368_v30 = vpop.f32.mrb[20].mxu0  ;;  %v561_v31 = vpop.f32.mrb[20].mxu1  ;;  %2713 = vmatpush3.bf16.msra.mxu0 %v3080_v16  ;;  %2825 = vmatpush3.bf16.msra.mxu1 %v3081_v17 }
 0x118   :  { %v369_v32 = vadd.f32 %v368_v30, %v3307_v37  ;;  %v562_v33 = vadd.f32 %v561_v31, %v3309_v38  ;;  %v370_v34 = vpop.f32.mrb[21].mxu0  ;;  %v563_v35 = vpop.f32.mrb[21].mxu1 }
 0x119   :  { %v371_v36 = vadd.f32 %v370_v34, %v3311_v39  ;;  %v564_v41 = vadd.f32 %v563_v35, %v3313_v40  ;;  %v372_v42 = vpop.f32.mrb[22].mxu0  ;;  %v565_v43 = vpop.f32.mrb[22].mxu1  ;;  %1144 = vmatprep.mubr.bf16.mxu0 %v807_v28  ;;  %1612 = vmatprep.mubr.bf16.mxu1 %v839_v29 }
 0x11a   :  { %v373_v44 = vadd.f32 %v372_v42, %v3307_v37  ;;  %v566_v45 = vadd.f32 %v565_v43, %v3309_v38  ;;  %v374_v46 = vpop.f32.mrb[23].mxu0  ;;  %v567_v47 = vpop.f32.mrb[23].mxu1  ;;  %1145 = vmatmul.mubr.bf16.gmra.mrb[80].mxu0 %v806_v26  ;;  %1613 = vmatmul.mubr.bf16.gmra.mrb[80].mxu1 %v838_v27  ;;  %v710_v50 = vmax.f32 %v369_v32, 0.0  ;;  %v712_v51 = vmax.f32 %v562_v33, 0.0 }
 0x11b   :  { %v375_v48 = vadd.f32 %v374_v46, %v3311_v39  ;;  %v568_v49 = vadd.f32 %v567_v47, %v3313_v40  ;;  %v711_v54 = vmax.f32 %v371_v36, 0.0  ;;  %v713_v55 = vmax.f32 %v564_v41, 0.0 }
 0x11c   :  { %v714_v52 = vmax.f32 %v373_v44, 0.0  ;;  %v716_v53 = vmax.f32 %v566_v45, 0.0 }
 0x11d   :  { %v715_v56 = vmax.f32 %v375_v48, 0.0  ;;  %v717_v57 = vmax.f32 %v568_v49, 0.0 }
 0x11e   :  { %v808_v58 = vpack.c.bf16 %v714_v52, %v710_v50  ;;  %v840_v59 = vpack.c.bf16 %v716_v53, %v712_v51 }
 0x11f   :  { %v809_v60 = vpack.c.bf16 %v715_v56, %v711_v54  ;;  %v841_v61 = vpack.c.bf16 %v717_v57, %v713_v55  ;;  %v378_v62 = vpop.f32.mrb[24].mxu0  ;;  %v571_v63 = vpop.f32.mrb[24].mxu1 }
 0x120   :  { %v379_v1 = vadd.f32 %v378_v62, %v3307_v37  ;;  %v572_v2 = vadd.f32 %v571_v63, %v3309_v38  ;;  %v380_v3 = vpop.f32.mrb[25].mxu0  ;;  %v573_v4 = vpop.f32.mrb[25].mxu1 }
 0x121   :  { %v381_v5 = vadd.f32 %v380_v3, %v3311_v39  ;;  %v574_v6 = vadd.f32 %v573_v4, %v3313_v40  ;;  %v382_v7 = vpop.f32.mrb[26].mxu0  ;;  %v575_v8 = vpop.f32.mrb[26].mxu1  ;;  %1154 = vmatprep.mubr.bf16.mxu0 %v809_v60  ;;  %1622 = vmatprep.mubr.bf16.mxu1 %v841_v61 }
 0x122   :  { %v383_v9 = vadd.f32 %v382_v7, %v3307_v37  ;;  %v576_v10 = vadd.f32 %v575_v8, %v3309_v38  ;;  %v384_v11 = vpop.f32.mrb[27].mxu0  ;;  %v577_v12 = vpop.f32.mrb[27].mxu1  ;;  %1155 = vmatmul.mubr.bf16.gmra.mrb[84].mxu0 %v808_v58  ;;  %1623 = vmatmul.mubr.bf16.gmra.mrb[84].mxu1 %v840_v59  ;;  %v718_v15 = vmax.f32 %v379_v1, 0.0  ;;  %v720_v16 = vmax.f32 %v572_v2, 0.0 }
 0x123   :  { %v385_v13 = vadd.f32 %v384_v11, %v3311_v39  ;;  %v578_v14 = vadd.f32 %v577_v12, %v3313_v40  ;;  %v719_v19 = vmax.f32 %v381_v5, 0.0  ;;  %v721_v20 = vmax.f32 %v574_v6, 0.0 }
 0x124   :  { %v722_v17 = vmax.f32 %v383_v9, 0.0  ;;  %v724_v18 = vmax.f32 %v576_v10, 0.0 }
 0x125   :  { %v723_v21 = vmax.f32 %v385_v13, 0.0  ;;  %v725_v22 = vmax.f32 %v578_v14, 0.0 }
 0x126   :  { %v810_v23 = vpack.c.bf16 %v722_v17, %v718_v15  ;;  %v842_v24 = vpack.c.bf16 %v724_v18, %v720_v16 }
 0x127   :  { %v811_v25 = vpack.c.bf16 %v723_v21, %v719_v19  ;;  %v843_v26 = vpack.c.bf16 %v725_v22, %v721_v20  ;;  %v388_v27 = vpop.f32.mrb[28].mxu0  ;;  %v581_v28 = vpop.f32.mrb[28].mxu1 }
 0x128   :  { %v389_v29 = vadd.f32 %v388_v27, %v3307_v37  ;;  %v582_v30 = vadd.f32 %v581_v28, %v3309_v38  ;;  %v390_v31 = vpop.f32.mrb[29].mxu0  ;;  %v583_v32 = vpop.f32.mrb[29].mxu1 }
 0x129   :  { %v391_v33 = vadd.f32 %v390_v31, %v3311_v39  ;;  %v584_v34 = vadd.f32 %v583_v32, %v3313_v40  ;;  %v392_v35 = vpop.f32.mrb[30].mxu0  ;;  %v585_v36 = vpop.f32.mrb[30].mxu1  ;;  %1164 = vmatprep.mubr.bf16.mxu0 %v811_v25  ;;  %1632 = vmatprep.mubr.bf16.mxu1 %v843_v26 }
 0x12a   :  { %v393_v41 = vadd.f32 %v392_v35, %v3307_v37  ;;  %v586_v42 = vadd.f32 %v585_v36, %v3309_v38  ;;  %v394_v43 = vpop.f32.mrb[31].mxu0  ;;  %v587_v44 = vpop.f32.mrb[31].mxu1  ;;  %1165 = vmatmul.mubr.bf16.gmra.mrb[88].mxu0 %v810_v23  ;;  %1633 = vmatmul.mubr.bf16.gmra.mrb[88].mxu1 %v842_v24  ;;  %v726_v47 = vmax.f32 %v389_v29, 0.0  ;;  %v728_v48 = vmax.f32 %v582_v30, 0.0 }
 0x12b   :  { %v395_v45 = vadd.f32 %v394_v43, %v3311_v39  ;;  %v588_v46 = vadd.f32 %v587_v44, %v3313_v40  ;;  %v727_v51 = vmax.f32 %v391_v33, 0.0  ;;  %v729_v52 = vmax.f32 %v584_v34, 0.0 }
 0x12c   :  { %v730_v49 = vmax.f32 %v393_v41, 0.0  ;;  %v732_v50 = vmax.f32 %v586_v42, 0.0 }
 0x12d   :  { %v731_v53 = vmax.f32 %v395_v45, 0.0  ;;  %v733_v54 = vmax.f32 %v588_v46, 0.0 }
 0x12e   :  { %v812_v55 = vpack.c.bf16 %v730_v49, %v726_v47  ;;  %v844_v56 = vpack.c.bf16 %v732_v50, %v728_v48 }
 0x12f   :  { %v813_v57 = vpack.c.bf16 %v731_v53, %v727_v51  ;;  %v845_v58 = vpack.c.bf16 %v733_v54, %v729_v52  ;;  %v398_v59 = vpop.f32.mrb[32].mxu0  ;;  %v591_v60 = vpop.f32.mrb[32].mxu1 }
 0x130   :  { %v399_v61 = vadd.f32 %v398_v59, %v3307_v37  ;;  %v592_v62 = vadd.f32 %v591_v60, %v3309_v38  ;;  %v400_v63 = vpop.f32.mrb[33].mxu0  ;;  %v593_v1 = vpop.f32.mrb[33].mxu1 }
 0x131   :  { %v401_v2 = vadd.f32 %v400_v63, %v3311_v39  ;;  %v594_v3 = vadd.f32 %v593_v1, %v3313_v40  ;;  %v402_v4 = vpop.f32.mrb[34].mxu0  ;;  %v595_v5 = vpop.f32.mrb[34].mxu1  ;;  %1174 = vmatprep.mubr.bf16.mxu0 %v813_v57  ;;  %1642 = vmatprep.mubr.bf16.mxu1 %v845_v58 }
 0x132   :  { %v403_v6 = vadd.f32 %v402_v4, %v3307_v37  ;;  %v596_v7 = vadd.f32 %v595_v5, %v3309_v38  ;;  %v404_v8 = vpop.f32.mrb[35].mxu0  ;;  %v597_v9 = vpop.f32.mrb[35].mxu1  ;;  %1175 = vmatmul.mubr.bf16.gmra.mrb[92].mxu0 %v812_v55  ;;  %1643 = vmatmul.mubr.bf16.gmra.mrb[92].mxu1 %v844_v56  ;;  %v734_v12 = vmax.f32 %v399_v61, 0.0  ;;  %v736_v13 = vmax.f32 %v592_v62, 0.0 }
 0x133   :  { %v405_v10 = vadd.f32 %v404_v8, %v3311_v39  ;;  %v598_v11 = vadd.f32 %v597_v9, %v3313_v40  ;;  %v735_v16 = vmax.f32 %v401_v2, 0.0  ;;  %v737_v17 = vmax.f32 %v594_v3, 0.0 }
 0x134   :  { %v738_v14 = vmax.f32 %v403_v6, 0.0  ;;  %v740_v15 = vmax.f32 %v596_v7, 0.0 }
 0x135   :  { %v739_v18 = vmax.f32 %v405_v10, 0.0  ;;  %v741_v19 = vmax.f32 %v598_v11, 0.0 }
 0x136   :  { %v814_v20 = vpack.c.bf16 %v738_v14, %v734_v12  ;;  %v846_v21 = vpack.c.bf16 %v740_v15, %v736_v13 }
 0x137   :  { %v815_v22 = vpack.c.bf16 %v739_v18, %v735_v16  ;;  %v847_v23 = vpack.c.bf16 %v741_v19, %v737_v17  ;;  %v408_v24 = vpop.f32.mrb[36].mxu0  ;;  %v601_v25 = vpop.f32.mrb[36].mxu1 }
 0x138   :  { %v409_v26 = vadd.f32 %v408_v24, %v3307_v37  ;;  %v602_v27 = vadd.f32 %v601_v25, %v3309_v38  ;;  %v410_v28 = vpop.f32.mrb[37].mxu0  ;;  %v603_v29 = vpop.f32.mrb[37].mxu1 }
 0x139   :  { %v411_v30 = vadd.f32 %v410_v28, %v3311_v39  ;;  %v604_v31 = vadd.f32 %v603_v29, %v3313_v40  ;;  %v412_v32 = vpop.f32.mrb[38].mxu0  ;;  %v605_v33 = vpop.f32.mrb[38].mxu1  ;;  %1184 = vmatprep.mubr.bf16.mxu0 %v815_v22  ;;  %1652 = vmatprep.mubr.bf16.mxu1 %v847_v23 }
 0x13a   :  { %v413_v34 = vadd.f32 %v412_v32, %v3307_v37  ;;  %v606_v35 = vadd.f32 %v605_v33, %v3309_v38  ;;  %v414_v36 = vpop.f32.mrb[39].mxu0  ;;  %v607_v41 = vpop.f32.mrb[39].mxu1  ;;  %1185 = vmatmul.mubr.bf16.gmra.mrb[96].mxu0 %v814_v20  ;;  %1653 = vmatmul.mubr.bf16.gmra.mrb[96].mxu1 %v846_v21  ;;  %v742_v44 = vmax.f32 %v409_v26, 0.0  ;;  %v744_v45 = vmax.f32 %v602_v27, 0.0 }
 0x13b   :  { %v415_v42 = vadd.f32 %v414_v36, %v3311_v39  ;;  %v608_v43 = vadd.f32 %v607_v41, %v3313_v40  ;;  %v743_v48 = vmax.f32 %v411_v30, 0.0  ;;  %v745_v49 = vmax.f32 %v604_v31, 0.0 }
 0x13c   :  { %v746_v46 = vmax.f32 %v413_v34, 0.0  ;;  %v748_v47 = vmax.f32 %v606_v35, 0.0 }
 0x13d   :  { %v747_v50 = vmax.f32 %v415_v42, 0.0  ;;  %v749_v51 = vmax.f32 %v608_v43, 0.0 }
 0x13e   :  { %v816_v52 = vpack.c.bf16 %v746_v46, %v742_v44  ;;  %v848_v53 = vpack.c.bf16 %v748_v47, %v744_v45 }
 0x13f   :  { %v817_v54 = vpack.c.bf16 %v747_v50, %v743_v48  ;;  %v849_v55 = vpack.c.bf16 %v749_v51, %v745_v49  ;;  %v418_v56 = vpop.f32.mrb[40].mxu0  ;;  %v611_v57 = vpop.f32.mrb[40].mxu1 }
 0x140   :  { %v419_v58 = vadd.f32 %v418_v56, %v3307_v37  ;;  %v612_v59 = vadd.f32 %v611_v57, %v3309_v38  ;;  %v420_v60 = vpop.f32.mrb[41].mxu0  ;;  %v613_v61 = vpop.f32.mrb[41].mxu1 }
 0x141   :  { %v421_v62 = vadd.f32 %v420_v60, %v3311_v39  ;;  %v614_v63 = vadd.f32 %v613_v61, %v3313_v40  ;;  %v422_v1 = vpop.f32.mrb[42].mxu0  ;;  %v615_v2 = vpop.f32.mrb[42].mxu1  ;;  %1194 = vmatprep.mubr.bf16.mxu0 %v817_v54  ;;  %1662 = vmatprep.mubr.bf16.mxu1 %v849_v55 }
 0x142   :  { %v423_v3 = vadd.f32 %v422_v1, %v3307_v37  ;;  %v616_v4 = vadd.f32 %v615_v2, %v3309_v38  ;;  %v424_v5 = vpop.f32.mrb[43].mxu0  ;;  %v617_v6 = vpop.f32.mrb[43].mxu1  ;;  %1195 = vmatmul.mubr.bf16.gmra.mrb[100].mxu0 %v816_v52  ;;  %1663 = vmatmul.mubr.bf16.gmra.mrb[100].mxu1 %v848_v53  ;;  %v750_v9 = vmax.f32 %v419_v58, 0.0  ;;  %v752_v10 = vmax.f32 %v612_v59, 0.0 }
 0x143   :  { %v425_v7 = vadd.f32 %v424_v5, %v3311_v39  ;;  %v618_v8 = vadd.f32 %v617_v6, %v3313_v40  ;;  %v751_v13 = vmax.f32 %v421_v62, 0.0  ;;  %v753_v14 = vmax.f32 %v614_v63, 0.0 }
 0x144   :  { %v754_v11 = vmax.f32 %v423_v3, 0.0  ;;  %v756_v12 = vmax.f32 %v616_v4, 0.0 }
 0x145   :  { %v755_v15 = vmax.f32 %v425_v7, 0.0  ;;  %v757_v16 = vmax.f32 %v618_v8, 0.0 }
 0x146   :  { %v818_v17 = vpack.c.bf16 %v754_v11, %v750_v9  ;;  %v850_v18 = vpack.c.bf16 %v756_v12, %v752_v10 }
 0x147   :  { %v819_v19 = vpack.c.bf16 %v755_v15, %v751_v13  ;;  %v851_v20 = vpack.c.bf16 %v757_v16, %v753_v14  ;;  %v428_v21 = vpop.f32.mrb[44].mxu0  ;;  %v621_v22 = vpop.f32.mrb[44].mxu1 }
 0x148   :  { %v429_v23 = vadd.f32 %v428_v21, %v3307_v37  ;;  %v622_v24 = vadd.f32 %v621_v22, %v3309_v38  ;;  %v430_v25 = vpop.f32.mrb[45].mxu0  ;;  %v623_v26 = vpop.f32.mrb[45].mxu1 }
 0x149   :  { %v431_v27 = vadd.f32 %v430_v25, %v3311_v39  ;;  %v624_v28 = vadd.f32 %v623_v26, %v3313_v40  ;;  %v432_v29 = vpop.f32.mrb[46].mxu0  ;;  %v625_v30 = vpop.f32.mrb[46].mxu1  ;;  %1204 = vmatprep.mubr.bf16.mxu0 %v819_v19  ;;  %1672 = vmatprep.mubr.bf16.mxu1 %v851_v20 }
 0x14a   :  { %v433_v31 = vadd.f32 %v432_v29, %v3307_v37  ;;  %v626_v32 = vadd.f32 %v625_v30, %v3309_v38  ;;  %v434_v33 = vpop.f32.mrb[47].mxu0  ;;  %v627_v34 = vpop.f32.mrb[47].mxu1  ;;  %1205 = vmatmul.mubr.bf16.gmra.mrb[104].mxu0 %v818_v17  ;;  %1673 = vmatmul.mubr.bf16.gmra.mrb[104].mxu1 %v850_v18  ;;  %v758_v41 = vmax.f32 %v429_v23, 0.0  ;;  %v760_v42 = vmax.f32 %v622_v24, 0.0 }
 0x14b   :  { %v435_v35 = vadd.f32 %v434_v33, %v3311_v39  ;;  %v628_v36 = vadd.f32 %v627_v34, %v3313_v40  ;;  %v759_v45 = vmax.f32 %v431_v27, 0.0  ;;  %v761_v46 = vmax.f32 %v624_v28, 0.0 }
 0x14c   :  { %v762_v43 = vmax.f32 %v433_v31, 0.0  ;;  %v764_v44 = vmax.f32 %v626_v32, 0.0 }
 0x14d   :  { %v763_v47 = vmax.f32 %v435_v35, 0.0  ;;  %v765_v48 = vmax.f32 %v628_v36, 0.0 }
 0x14e   :  { %v820_v49 = vpack.c.bf16 %v762_v43, %v758_v41  ;;  %v852_v50 = vpack.c.bf16 %v764_v44, %v760_v42 }
 0x14f   :  { %v821_v51 = vpack.c.bf16 %v763_v47, %v759_v45  ;;  %v853_v52 = vpack.c.bf16 %v765_v48, %v761_v46  ;;  %v438_v53 = vpop.f32.mrb[48].mxu0  ;;  %v631_v54 = vpop.f32.mrb[48].mxu1 }
 0x150   :  { %v439_v55 = vadd.f32 %v438_v53, %v3307_v37  ;;  %v632_v56 = vadd.f32 %v631_v54, %v3309_v38  ;;  %v440_v57 = vpop.f32.mrb[49].mxu0  ;;  %v633_v58 = vpop.f32.mrb[49].mxu1 }
 0x151   :  { %v441_v59 = vadd.f32 %v440_v57, %v3311_v39  ;;  %v634_v60 = vadd.f32 %v633_v58, %v3313_v40  ;;  %v442_v61 = vpop.f32.mrb[50].mxu0  ;;  %v635_v62 = vpop.f32.mrb[50].mxu1  ;;  %1214 = vmatprep.mubr.bf16.mxu0 %v821_v51  ;;  %1682 = vmatprep.mubr.bf16.mxu1 %v853_v52 }
 0x152   :  { %v443_v63 = vadd.f32 %v442_v61, %v3307_v37  ;;  %v636_v1 = vadd.f32 %v635_v62, %v3309_v38  ;;  %v444_v2 = vpop.f32.mrb[51].mxu0  ;;  %v637_v3 = vpop.f32.mrb[51].mxu1  ;;  %1215 = vmatmul.mubr.bf16.gmra.mrb[108].mxu0 %v820_v49  ;;  %1683 = vmatmul.mubr.bf16.gmra.mrb[108].mxu1 %v852_v50  ;;  %v766_v6 = vmax.f32 %v439_v55, 0.0  ;;  %v768_v7 = vmax.f32 %v632_v56, 0.0 }
 0x153   :  { %v445_v4 = vadd.f32 %v444_v2, %v3311_v39  ;;  %v638_v5 = vadd.f32 %v637_v3, %v3313_v40  ;;  %v767_v10 = vmax.f32 %v441_v59, 0.0  ;;  %v769_v11 = vmax.f32 %v634_v60, 0.0 }
 0x154   :  { %v770_v8 = vmax.f32 %v443_v63, 0.0  ;;  %v772_v9 = vmax.f32 %v636_v1, 0.0 }
 0x155   :  { %v771_v12 = vmax.f32 %v445_v4, 0.0  ;;  %v773_v13 = vmax.f32 %v638_v5, 0.0 }
 0x156   :  { %v822_v14 = vpack.c.bf16 %v770_v8, %v766_v6  ;;  %v854_v15 = vpack.c.bf16 %v772_v9, %v768_v7 }
 0x157   :  { %v823_v16 = vpack.c.bf16 %v771_v12, %v767_v10  ;;  %v855_v17 = vpack.c.bf16 %v773_v13, %v769_v11  ;;  %v448_v18 = vpop.f32.mrb[52].mxu0  ;;  %v641_v19 = vpop.f32.mrb[52].mxu1 }
 0x158   :  { %v449_v20 = vadd.f32 %v448_v18, %v3307_v37  ;;  %v642_v21 = vadd.f32 %v641_v19, %v3309_v38  ;;  %v450_v22 = vpop.f32.mrb[53].mxu0  ;;  %v643_v23 = vpop.f32.mrb[53].mxu1 }
 0x159   :  { %v451_v24 = vadd.f32 %v450_v22, %v3311_v39  ;;  %v644_v25 = vadd.f32 %v643_v23, %v3313_v40  ;;  %v452_v26 = vpop.f32.mrb[54].mxu0  ;;  %v645_v27 = vpop.f32.mrb[54].mxu1  ;;  %1224 = vmatprep.mubr.bf16.mxu0 %v823_v16  ;;  %1692 = vmatprep.mubr.bf16.mxu1 %v855_v17 }
 0x15a   :  { %v453_v28 = vadd.f32 %v452_v26, %v3307_v37  ;;  %v646_v29 = vadd.f32 %v645_v27, %v3309_v38  ;;  %v454_v30 = vpop.f32.mrb[55].mxu0  ;;  %v647_v31 = vpop.f32.mrb[55].mxu1  ;;  %1225 = vmatmul.mubr.bf16.gmra.mrb[112].mxu0 %v822_v14  ;;  %1693 = vmatmul.mubr.bf16.gmra.mrb[112].mxu1 %v854_v15  ;;  %v774_v34 = vmax.f32 %v449_v20, 0.0  ;;  %v776_v35 = vmax.f32 %v642_v21, 0.0 }
 0x15b   :  { %v455_v32 = vadd.f32 %v454_v30, %v3311_v39  ;;  %v648_v33 = vadd.f32 %v647_v31, %v3313_v40  ;;  %v775_v42 = vmax.f32 %v451_v24, 0.0  ;;  %v777_v43 = vmax.f32 %v644_v25, 0.0 }
 0x15c   :  { %v778_v36 = vmax.f32 %v453_v28, 0.0  ;;  %v780_v41 = vmax.f32 %v646_v29, 0.0 }
 0x15d   :  { %v779_v44 = vmax.f32 %v455_v32, 0.0  ;;  %v781_v45 = vmax.f32 %v648_v33, 0.0 }
 0x15e   :  { %v824_v46 = vpack.c.bf16 %v778_v36, %v774_v34  ;;  %v856_v47 = vpack.c.bf16 %v780_v41, %v776_v35 }
 0x15f   :  { %v825_v48 = vpack.c.bf16 %v779_v44, %v775_v42  ;;  %v857_v49 = vpack.c.bf16 %v781_v45, %v777_v43  ;;  %v458_v50 = vpop.f32.mrb[56].mxu0  ;;  %v651_v51 = vpop.f32.mrb[56].mxu1  ;;  %v3082_v45 = vld [vmem:[%s3847_s4] sm:$0x77] }
 0x160   :  { %v459_v52 = vadd.f32 %v458_v50, %v3307_v37  ;;  %v652_v53 = vadd.f32 %v651_v51, %v3309_v38  ;;  %v460_v54 = vpop.f32.mrb[57].mxu0  ;;  %v653_v55 = vpop.f32.mrb[57].mxu1 }
 0x161   :  { %v461_v56 = vadd.f32 %v460_v54, %v3311_v39  ;;  %v654_v57 = vadd.f32 %v653_v55, %v3313_v40  ;;  %v462_v58 = vpop.f32.mrb[58].mxu0  ;;  %v655_v59 = vpop.f32.mrb[58].mxu1  ;;  %1234 = vmatprep.mubr.bf16.mxu0 %v825_v48  ;;  %1702 = vmatprep.mubr.bf16.mxu1 %v857_v49 }
 0x162   :  { %v463_v60 = vadd.f32 %v462_v58, %v3307_v37  ;;  %v656_v61 = vadd.f32 %v655_v59, %v3309_v38  ;;  %v464_v62 = vpop.f32.mrb[59].mxu0  ;;  %v657_v63 = vpop.f32.mrb[59].mxu1  ;;  %1235 = vmatmul.mubr.bf16.gmra.mrb[116].mxu0 %v824_v46  ;;  %1703 = vmatmul.mubr.bf16.gmra.mrb[116].mxu1 %v856_v47  ;;  %v782_v3 = vmax.f32 %v459_v52, 0.0  ;;  %v784_v4 = vmax.f32 %v652_v53, 0.0  ;;  %v3083_v47 = vld [vmem:[%s3847_s4 + $0x8] sm:$0x77] }
 0x163   :  { %v465_v1 = vadd.f32 %v464_v62, %v3311_v39  ;;  %v658_v2 = vadd.f32 %v657_v63, %v3313_v40  ;;  %v783_v7 = vmax.f32 %v461_v56, 0.0  ;;  %v785_v8 = vmax.f32 %v654_v57, 0.0 }
 0x164   :  { %v786_v5 = vmax.f32 %v463_v60, 0.0  ;;  %v788_v6 = vmax.f32 %v656_v61, 0.0 }
 0x165   :  { %v787_v9 = vmax.f32 %v465_v1, 0.0  ;;  %v789_v10 = vmax.f32 %v658_v2, 0.0 }
 0x166   :  { %v826_v11 = vpack.c.bf16 %v786_v5, %v782_v3  ;;  %v858_v12 = vpack.c.bf16 %v788_v6, %v784_v4 }
 0x167   :  { %v827_v13 = vpack.c.bf16 %v787_v9, %v783_v7  ;;  %v859_v14 = vpack.c.bf16 %v789_v10, %v785_v8  ;;  %v468_v15 = vpop.f32.mrb[60].mxu0  ;;  %v661_v16 = vpop.f32.mrb[60].mxu1 }
 0x168   :  { %v469_v17 = vadd.f32 %v468_v15, %v3307_v37  ;;  %v662_v18 = vadd.f32 %v661_v16, %v3309_v38  ;;  %v470_v19 = vpop.f32.mrb[61].mxu0  ;;  %v663_v20 = vpop.f32.mrb[61].mxu1 }
 0x169   :  { %v471_v21 = vadd.f32 %v470_v19, %v3311_v39  ;;  %v664_v22 = vadd.f32 %v663_v20, %v3313_v40  ;;  %v472_v23 = vpop.f32.mrb[62].mxu0  ;;  %v665_v24 = vpop.f32.mrb[62].mxu1  ;;  %1244 = vmatprep.mubr.bf16.mxu0 %v827_v13  ;;  %1712 = vmatprep.mubr.bf16.mxu1 %v859_v14 }
 0x16a   :  { %v473_v25 = vadd.f32 %v472_v23, %v3307_v37  ;;  %v666_v26 = vadd.f32 %v665_v24, %v3309_v38  ;;  %v474_v27 = vpop.f32.mrb[63].mxu0  ;;  %v667_v28 = vpop.f32.mrb[63].mxu1  ;;  %1245 = vmatmul.mubr.bf16.gmra.mrb[120].mxu0 %v826_v11  ;;  %1713 = vmatmul.mubr.bf16.gmra.mrb[120].mxu1 %v858_v12  ;;  %v790_v31 = vmax.f32 %v469_v17, 0.0  ;;  %v792_v32 = vmax.f32 %v662_v18, 0.0 }
 0x16b   :  { %v475_v29 = vadd.f32 %v474_v27, %v3311_v39  ;;  %v668_v30 = vadd.f32 %v667_v28, %v3313_v40  ;;  %v791_v35 = vmax.f32 %v471_v21, 0.0  ;;  %v793_v36 = vmax.f32 %v664_v22, 0.0 }
 0x16c   :  { %v794_v33 = vmax.f32 %v473_v25, 0.0  ;;  %v796_v34 = vmax.f32 %v666_v26, 0.0  ;;  %v896_v39 = vsub.s32 1, %v3297_v0  ;;  %v900_v40 = vsub.s32 5, %v3297_v0 }
 0x16d   :  { %v795_v41 = vmax.f32 %v475_v29, 0.0  ;;  %v797_v42 = vmax.f32 %v668_v30, 0.0 }
 0x16e   :  { %v828_v43 = vpack.c.bf16 %v794_v33, %v790_v31  ;;  %v860_v37 = vpack.c.bf16 %v796_v34, %v792_v32  ;;  %v897_v46 = vrot.slane %v3082_v45, %v896_v39  ;;  %v1365_v48 = vrot.slane %v3083_v47, %v896_v39 }
 0x16f   :  { %v829_v44 = vpack.c.bf16 %v795_v41, %v791_v35  ;;  %v861_v38 = vpack.c.bf16 %v797_v42, %v793_v36  ;;  %v901_v49 = vrot.slane %v3082_v45, %v900_v40  ;;  %v1369_v50 = vrot.slane %v3083_v47, %v900_v40 }
 0x170   :  { %v3541_v51 = vrot.slane %v897_v46, %v896_v39  ;;  %v3543_v52 = vrot.slane %v1365_v48, %v896_v39 }
 0x171   :  { %1254 = vmatprep.mubr.bf16.mxu0 %v829_v44  ;;  %1722 = vmatprep.mubr.bf16.mxu1 %v861_v38  ;;  %v3545_v53 = vrot.slane %v901_v49, %v896_v39  ;;  %v3547_v54 = vrot.slane %v1369_v50, %v896_v39 }
 0x172   :  { %1255 = vmatmul.mubr.bf16.gmra.mrb[124].mxu0 %v828_v43  ;;  %1723 = vmatmul.mubr.bf16.gmra.mrb[124].mxu1 %v860_v37 }
 0x1cd   :  { %v1106_v55 = vpop.f32.mrb[64].mxu0  ;;  %v1574_v56 = vpop.f32.mrb[64].mxu1 }
 0x1ce   :  { %v1107_v57 = vadd.f32 %v1106_v55, %v3541_v51  ;;  %v1575_v58 = vadd.f32 %v1574_v56, %v3543_v52  ;;  %v1108_v59 = vpop.f32.mrb[65].mxu0  ;;  %v1576_v60 = vpop.f32.mrb[65].mxu1 }
 0x1cf   :  { %v1109_v61 = vadd.f32 %v1108_v59, %v3545_v53  ;;  %v1577_v62 = vadd.f32 %v1576_v60, %v3547_v54  ;;  %v1110_v63 = vpop.f32.mrb[66].mxu0  ;;  %v1578_v1 = vpop.f32.mrb[66].mxu1 }
 0x1d0   :  { %v1111_v2 = vadd.f32 %v1110_v63, %v3541_v51  ;;  %v1579_v3 = vadd.f32 %v1578_v1, %v3543_v52  ;;  %v1112_v4 = vpop.f32.mrb[67].mxu0  ;;  %v1580_v5 = vpop.f32.mrb[67].mxu1  ;;  %v1265_v8 = vmax.f32 %v1107_v57, 0.0  ;;  %v1733_v9 = vmax.f32 %v1575_v58, 0.0 }
 0x1d1   :  { %v1113_v6 = vadd.f32 %v1112_v4, %v3545_v53  ;;  %v1581_v7 = vadd.f32 %v1580_v5, %v3547_v54  ;;  %v1266_v12 = vmax.f32 %v1109_v61, 0.0  ;;  %v1734_v13 = vmax.f32 %v1577_v62, 0.0 }
 0x1d2   :  { %v1267_v10 = vmax.f32 %v1111_v2, 0.0  ;;  %v1735_v11 = vmax.f32 %v1579_v3, 0.0 }
 0x1d3   :  { %v1268_v14 = vmax.f32 %v1113_v6, 0.0  ;;  %v1736_v15 = vmax.f32 %v1581_v7, 0.0 }
 0x1d4   :  { %v1797_v16 = vpack.c.bf16 %v1267_v10, %v1265_v8  ;;  %v1861_v17 = vpack.c.bf16 %v1735_v11, %v1733_v9 }
 0x1d5   :  { %v1798_v18 = vpack.c.bf16 %v1268_v14, %v1266_v12  ;;  %v1862_v19 = vpack.c.bf16 %v1736_v15, %v1734_v13  ;;  %v1116_v20 = vpop.f32.mrb[68].mxu0  ;;  %v1584_v21 = vpop.f32.mrb[68].mxu1 }
 0x1d6   :  { %v1117_v22 = vadd.f32 %v1116_v20, %v3541_v51  ;;  %v1585_v23 = vadd.f32 %v1584_v21, %v3543_v52  ;;  %v1118_v24 = vpop.f32.mrb[69].mxu0  ;;  %v1586_v25 = vpop.f32.mrb[69].mxu1 }
 0x1d7   :  { %v1119_v26 = vadd.f32 %v1118_v24, %v3545_v53  ;;  %v1587_v27 = vadd.f32 %v1586_v25, %v3547_v54  ;;  %v1120_v28 = vpop.f32.mrb[70].mxu0  ;;  %v1588_v29 = vpop.f32.mrb[70].mxu1  ;;  %2054 = vmatprep.mubr.bf16.mxu0 %v1862_v19  ;;  %2311 = vmatprep.mubr.bf16.mxu1 %v1798_v18 }
 0x1d8   :  { %v1121_v30 = vadd.f32 %v1120_v28, %v3541_v51  ;;  %v1589_v31 = vadd.f32 %v1588_v29, %v3543_v52  ;;  %v1122_v32 = vpop.f32.mrb[71].mxu0  ;;  %v1590_v33 = vpop.f32.mrb[71].mxu1  ;;  %2055 = vmatmul.mubr.bf16.vlgmr.msra.gmra.mrb[128].mxu0 %v1861_v17  ;;  %2312 = vmatmul.mubr.bf16.vlgmr.msra.gmra.mrb[128].mxu1 %v1797_v16  ;;  %v1269_v36 = vmax.f32 %v1117_v22, 0.0  ;;  %v1737_v41 = vmax.f32 %v1585_v23, 0.0 }
 0x1d9   :  { %v1123_v34 = vadd.f32 %v1122_v32, %v3545_v53  ;;  %v1591_v35 = vadd.f32 %v1590_v33, %v3547_v54  ;;  %v1270_v37 = vmax.f32 %v1119_v26, 0.0  ;;  %v1738_v44 = vmax.f32 %v1587_v27, 0.0 }
 0x1da   :  { %v1271_v42 = vmax.f32 %v1121_v30, 0.0  ;;  %v1739_v43 = vmax.f32 %v1589_v31, 0.0 }
 0x1db   :  { %v1272_v38 = vmax.f32 %v1123_v34, 0.0  ;;  %v1740_v39 = vmax.f32 %v1591_v35, 0.0 }
 0x1dc   :  { %v1799_v40 = vpack.c.bf16 %v1271_v42, %v1269_v36  ;;  %v1863_v45 = vpack.c.bf16 %v1739_v43, %v1737_v41 }
 0x1dd   :  { %v1800_v46 = vpack.c.bf16 %v1272_v38, %v1270_v37  ;;  %v1864_v47 = vpack.c.bf16 %v1740_v39, %v1738_v44  ;;  %v1126_v48 = vpop.f32.mrb[72].mxu0  ;;  %v1594_v49 = vpop.f32.mrb[72].mxu1 }
 0x1de   :  { %v1127_v50 = vadd.f32 %v1126_v48, %v3541_v51  ;;  %v1595_v55 = vadd.f32 %v1594_v49, %v3543_v52  ;;  %v1128_v56 = vpop.f32.mrb[73].mxu0  ;;  %v1596_v57 = vpop.f32.mrb[73].mxu1 }
 0x1df   :  { %v1129_v58 = vadd.f32 %v1128_v56, %v3545_v53  ;;  %v1597_v59 = vadd.f32 %v1596_v57, %v3547_v54  ;;  %v1130_v60 = vpop.f32.mrb[74].mxu0  ;;  %v1598_v61 = vpop.f32.mrb[74].mxu1  ;;  %2062 = vmatprep.mubr.bf16.mxu0 %v1864_v47  ;;  %2319 = vmatprep.mubr.bf16.mxu1 %v1800_v46 }
 0x1e0   :  { %v1131_v62 = vadd.f32 %v1130_v60, %v3541_v51  ;;  %v1599_v63 = vadd.f32 %v1598_v61, %v3543_v52  ;;  %v1132_v1 = vpop.f32.mrb[75].mxu0  ;;  %v1600_v2 = vpop.f32.mrb[75].mxu1  ;;  %2063 = vmatmul.mubr.bf16.gmra.mrb[132].mxu0 %v1863_v45  ;;  %2320 = vmatmul.mubr.bf16.gmra.mrb[132].mxu1 %v1799_v40  ;;  %v1273_v5 = vmax.f32 %v1127_v50, 0.0  ;;  %v1741_v6 = vmax.f32 %v1595_v55, 0.0 }
 0x1e1   :  { %v1133_v3 = vadd.f32 %v1132_v1, %v3545_v53  ;;  %v1601_v4 = vadd.f32 %v1600_v2, %v3547_v54  ;;  %v1274_v9 = vmax.f32 %v1129_v58, 0.0  ;;  %v1742_v10 = vmax.f32 %v1597_v59, 0.0 }
 0x1e2   :  { %v1275_v7 = vmax.f32 %v1131_v62, 0.0  ;;  %v1743_v8 = vmax.f32 %v1599_v63, 0.0 }
 0x1e3   :  { %v1276_v11 = vmax.f32 %v1133_v3, 0.0  ;;  %v1744_v12 = vmax.f32 %v1601_v4, 0.0 }
 0x1e4   :  { %v1801_v13 = vpack.c.bf16 %v1275_v7, %v1273_v5  ;;  %v1865_v14 = vpack.c.bf16 %v1743_v8, %v1741_v6 }
 0x1e5   :  { %v1802_v15 = vpack.c.bf16 %v1276_v11, %v1274_v9  ;;  %v1866_v16 = vpack.c.bf16 %v1744_v12, %v1742_v10  ;;  %v1136_v17 = vpop.f32.mrb[76].mxu0  ;;  %v1604_v18 = vpop.f32.mrb[76].mxu1 }
 0x1e6   :  { %v1137_v19 = vadd.f32 %v1136_v17, %v3541_v51  ;;  %v1605_v20 = vadd.f32 %v1604_v18, %v3543_v52  ;;  %v1138_v21 = vpop.f32.mrb[77].mxu0  ;;  %v1606_v22 = vpop.f32.mrb[77].mxu1 }
 0x1e7   :  { %v1139_v23 = vadd.f32 %v1138_v21, %v3545_v53  ;;  %v1607_v24 = vadd.f32 %v1606_v22, %v3547_v54  ;;  %v1140_v25 = vpop.f32.mrb[78].mxu0  ;;  %v1608_v26 = vpop.f32.mrb[78].mxu1  ;;  %2070 = vmatprep.mubr.bf16.mxu0 %v1866_v16  ;;  %2327 = vmatprep.mubr.bf16.mxu1 %v1802_v15 }
 0x1e8   :  { %v1141_v27 = vadd.f32 %v1140_v25, %v3541_v51  ;;  %v1609_v28 = vadd.f32 %v1608_v26, %v3543_v52  ;;  %v1142_v29 = vpop.f32.mrb[79].mxu0  ;;  %v1610_v30 = vpop.f32.mrb[79].mxu1  ;;  %2071 = vmatmul.mubr.bf16.gmra.mrb[136].mxu0 %v1865_v14  ;;  %2328 = vmatmul.mubr.bf16.gmra.mrb[136].mxu1 %v1801_v13  ;;  %v1277_v33 = vmax.f32 %v1137_v19, 0.0  ;;  %v1745_v34 = vmax.f32 %v1605_v20, 0.0 }
 0x1e9   :  { %v1143_v31 = vadd.f32 %v1142_v29, %v3545_v53  ;;  %v1611_v32 = vadd.f32 %v1610_v30, %v3547_v54  ;;  %v1278_v41 = vmax.f32 %v1139_v23, 0.0  ;;  %v1746_v42 = vmax.f32 %v1607_v24, 0.0 }
 0x1ea   :  { %v1279_v35 = vmax.f32 %v1141_v27, 0.0  ;;  %v1747_v36 = vmax.f32 %v1609_v28, 0.0 }
 0x1eb   :  { %v1280_v43 = vmax.f32 %v1143_v31, 0.0  ;;  %v1748_v37 = vmax.f32 %v1611_v32, 0.0 }
 0x1ec   :  { %v1803_v44 = vpack.c.bf16 %v1279_v35, %v1277_v33  ;;  %v1867_v38 = vpack.c.bf16 %v1747_v36, %v1745_v34 }
 0x1ed   :  { %v1804_v39 = vpack.c.bf16 %v1280_v43, %v1278_v41  ;;  %v1868_v40 = vpack.c.bf16 %v1748_v37, %v1746_v42  ;;  %v1146_v45 = vpop.f32.mrb[80].mxu0  ;;  %v1614_v46 = vpop.f32.mrb[80].mxu1 }
 0x1ee   :  { %v1147_v47 = vadd.f32 %v1146_v45, %v3541_v51  ;;  %v1615_v48 = vadd.f32 %v1614_v46, %v3543_v52  ;;  %v1148_v49 = vpop.f32.mrb[81].mxu0  ;;  %v1616_v50 = vpop.f32.mrb[81].mxu1 }
 0x1ef   :  { %v1149_v55 = vadd.f32 %v1148_v49, %v3545_v53  ;;  %v1617_v56 = vadd.f32 %v1616_v50, %v3547_v54  ;;  %v1150_v57 = vpop.f32.mrb[82].mxu0  ;;  %v1618_v58 = vpop.f32.mrb[82].mxu1  ;;  %2078 = vmatprep.mubr.bf16.mxu0 %v1868_v40  ;;  %2335 = vmatprep.mubr.bf16.mxu1 %v1804_v39 }
 0x1f0   :  { %v1151_v59 = vadd.f32 %v1150_v57, %v3541_v51  ;;  %v1619_v60 = vadd.f32 %v1618_v58, %v3543_v52  ;;  %v1152_v61 = vpop.f32.mrb[83].mxu0  ;;  %v1620_v62 = vpop.f32.mrb[83].mxu1  ;;  %2079 = vmatmul.mubr.bf16.gmra.mrb[140].mxu0 %v1867_v38  ;;  %2336 = vmatmul.mubr.bf16.gmra.mrb[140].mxu1 %v1803_v44  ;;  %v1281_v2 = vmax.f32 %v1147_v47, 0.0  ;;  %v1749_v3 = vmax.f32 %v1615_v48, 0.0 }
 0x1f1   :  { %v1153_v63 = vadd.f32 %v1152_v61, %v3545_v53  ;;  %v1621_v1 = vadd.f32 %v1620_v62, %v3547_v54  ;;  %v1282_v6 = vmax.f32 %v1149_v55, 0.0  ;;  %v1750_v7 = vmax.f32 %v1617_v56, 0.0 }
 0x1f2   :  { %v1283_v4 = vmax.f32 %v1151_v59, 0.0  ;;  %v1751_v5 = vmax.f32 %v1619_v60, 0.0 }
 0x1f3   :  { %v1284_v8 = vmax.f32 %v1153_v63, 0.0  ;;  %v1752_v9 = vmax.f32 %v1621_v1, 0.0 }
 0x1f4   :  { %v1805_v10 = vpack.c.bf16 %v1283_v4, %v1281_v2  ;;  %v1869_v11 = vpack.c.bf16 %v1751_v5, %v1749_v3 }
 0x1f5   :  { %v1806_v12 = vpack.c.bf16 %v1284_v8, %v1282_v6  ;;  %v1870_v13 = vpack.c.bf16 %v1752_v9, %v1750_v7  ;;  %v1156_v14 = vpop.f32.mrb[84].mxu0  ;;  %v1624_v15 = vpop.f32.mrb[84].mxu1 }
 0x1f6   :  { %v1157_v16 = vadd.f32 %v1156_v14, %v3541_v51  ;;  %v1625_v17 = vadd.f32 %v1624_v15, %v3543_v52  ;;  %v1158_v18 = vpop.f32.mrb[85].mxu0  ;;  %v1626_v19 = vpop.f32.mrb[85].mxu1 }
 0x1f7   :  { %v1159_v20 = vadd.f32 %v1158_v18, %v3545_v53  ;;  %v1627_v21 = vadd.f32 %v1626_v19, %v3547_v54  ;;  %v1160_v22 = vpop.f32.mrb[86].mxu0  ;;  %v1628_v23 = vpop.f32.mrb[86].mxu1  ;;  %2086 = vmatprep.mubr.bf16.mxu0 %v1870_v13  ;;  %2343 = vmatprep.mubr.bf16.mxu1 %v1806_v12 }
 0x1f8   :  { %v1161_v24 = vadd.f32 %v1160_v22, %v3541_v51  ;;  %v1629_v25 = vadd.f32 %v1628_v23, %v3543_v52  ;;  %v1162_v26 = vpop.f32.mrb[87].mxu0  ;;  %v1630_v27 = vpop.f32.mrb[87].mxu1  ;;  %2087 = vmatmul.mubr.bf16.gmra.mrb[144].mxu0 %v1869_v11  ;;  %2344 = vmatmul.mubr.bf16.gmra.mrb[144].mxu1 %v1805_v10  ;;  %v1285_v30 = vmax.f32 %v1157_v16, 0.0  ;;  %v1753_v31 = vmax.f32 %v1625_v17, 0.0 }
 0x1f9   :  { %v1163_v28 = vadd.f32 %v1162_v26, %v3545_v53  ;;  %v1631_v29 = vadd.f32 %v1630_v27, %v3547_v54  ;;  %v1286_v34 = vmax.f32 %v1159_v20, 0.0  ;;  %v1754_v35 = vmax.f32 %v1627_v21, 0.0 }
 0x1fa   :  { %v1287_v32 = vmax.f32 %v1161_v24, 0.0  ;;  %v1755_v33 = vmax.f32 %v1629_v25, 0.0 }
 0x1fb   :  { %v1288_v36 = vmax.f32 %v1163_v28, 0.0  ;;  %v1756_v41 = vmax.f32 %v1631_v29, 0.0 }
 0x1fc   :  { %v1807_v42 = vpack.c.bf16 %v1287_v32, %v1285_v30  ;;  %v1871_v43 = vpack.c.bf16 %v1755_v33, %v1753_v31 }
 0x1fd   :  { %v1808_v37 = vpack.c.bf16 %v1288_v36, %v1286_v34  ;;  %v1872_v44 = vpack.c.bf16 %v1756_v41, %v1754_v35  ;;  %v1166_v38 = vpop.f32.mrb[88].mxu0  ;;  %v1634_v39 = vpop.f32.mrb[88].mxu1 }
 0x1fe   :  { %v1167_v40 = vadd.f32 %v1166_v38, %v3541_v51  ;;  %v1635_v45 = vadd.f32 %v1634_v39, %v3543_v52  ;;  %v1168_v46 = vpop.f32.mrb[89].mxu0  ;;  %v1636_v47 = vpop.f32.mrb[89].mxu1 }
 0x1ff   :  { %v1169_v48 = vadd.f32 %v1168_v46, %v3545_v53  ;;  %v1637_v49 = vadd.f32 %v1636_v47, %v3547_v54  ;;  %v1170_v50 = vpop.f32.mrb[90].mxu0  ;;  %v1638_v55 = vpop.f32.mrb[90].mxu1  ;;  %2094 = vmatprep.mubr.bf16.mxu0 %v1872_v44  ;;  %2351 = vmatprep.mubr.bf16.mxu1 %v1808_v37 }
 0x200   :  { %v1171_v56 = vadd.f32 %v1170_v50, %v3541_v51  ;;  %v1639_v57 = vadd.f32 %v1638_v55, %v3543_v52  ;;  %v1172_v58 = vpop.f32.mrb[91].mxu0  ;;  %v1640_v59 = vpop.f32.mrb[91].mxu1  ;;  %2095 = vmatmul.mubr.bf16.gmra.mrb[148].mxu0 %v1871_v43  ;;  %2352 = vmatmul.mubr.bf16.gmra.mrb[148].mxu1 %v1807_v42  ;;  %v1289_v62 = vmax.f32 %v1167_v40, 0.0  ;;  %v1757_v63 = vmax.f32 %v1635_v45, 0.0 }
 0x201   :  { %v1173_v60 = vadd.f32 %v1172_v58, %v3545_v53  ;;  %v1641_v61 = vadd.f32 %v1640_v59, %v3547_v54  ;;  %v1290_v3 = vmax.f32 %v1169_v48, 0.0  ;;  %v1758_v4 = vmax.f32 %v1637_v49, 0.0 }
 0x202   :  { %v1291_v1 = vmax.f32 %v1171_v56, 0.0  ;;  %v1759_v2 = vmax.f32 %v1639_v57, 0.0 }
 0x203   :  { %v1292_v5 = vmax.f32 %v1173_v60, 0.0  ;;  %v1760_v6 = vmax.f32 %v1641_v61, 0.0 }
 0x204   :  { %v1809_v7 = vpack.c.bf16 %v1291_v1, %v1289_v62  ;;  %v1873_v8 = vpack.c.bf16 %v1759_v2, %v1757_v63 }
 0x205   :  { %v1810_v9 = vpack.c.bf16 %v1292_v5, %v1290_v3  ;;  %v1874_v10 = vpack.c.bf16 %v1760_v6, %v1758_v4  ;;  %v1176_v11 = vpop.f32.mrb[92].mxu0  ;;  %v1644_v12 = vpop.f32.mrb[92].mxu1 }
 0x206   :  { %v1177_v13 = vadd.f32 %v1176_v11, %v3541_v51  ;;  %v1645_v14 = vadd.f32 %v1644_v12, %v3543_v52  ;;  %v1178_v15 = vpop.f32.mrb[93].mxu0  ;;  %v1646_v16 = vpop.f32.mrb[93].mxu1 }
 0x207   :  { %v1179_v17 = vadd.f32 %v1178_v15, %v3545_v53  ;;  %v1647_v18 = vadd.f32 %v1646_v16, %v3547_v54  ;;  %v1180_v19 = vpop.f32.mrb[94].mxu0  ;;  %v1648_v20 = vpop.f32.mrb[94].mxu1  ;;  %2102 = vmatprep.mubr.bf16.mxu0 %v1874_v10  ;;  %2359 = vmatprep.mubr.bf16.mxu1 %v1810_v9 }
 0x208   :  { %v1181_v21 = vadd.f32 %v1180_v19, %v3541_v51  ;;  %v1649_v22 = vadd.f32 %v1648_v20, %v3543_v52  ;;  %v1182_v23 = vpop.f32.mrb[95].mxu0  ;;  %v1650_v24 = vpop.f32.mrb[95].mxu1  ;;  %2103 = vmatmul.mubr.bf16.gmra.mrb[152].mxu0 %v1873_v8  ;;  %2360 = vmatmul.mubr.bf16.gmra.mrb[152].mxu1 %v1809_v7  ;;  %v1293_v27 = vmax.f32 %v1177_v13, 0.0  ;;  %v1761_v28 = vmax.f32 %v1645_v14, 0.0 }
 0x209   :  { %v1183_v25 = vadd.f32 %v1182_v23, %v3545_v53  ;;  %v1651_v26 = vadd.f32 %v1650_v24, %v3547_v54  ;;  %v1294_v31 = vmax.f32 %v1179_v17, 0.0  ;;  %v1762_v32 = vmax.f32 %v1647_v18, 0.0 }
 0x20a   :  { %v1295_v29 = vmax.f32 %v1181_v21, 0.0  ;;  %v1763_v30 = vmax.f32 %v1649_v22, 0.0 }
 0x20b   :  { %v1296_v33 = vmax.f32 %v1183_v25, 0.0  ;;  %v1764_v34 = vmax.f32 %v1651_v26, 0.0 }
 0x20c   :  { %v1811_v35 = vpack.c.bf16 %v1295_v29, %v1293_v27  ;;  %v1875_v36 = vpack.c.bf16 %v1763_v30, %v1761_v28 }
 0x20d   :  { %v1812_v41 = vpack.c.bf16 %v1296_v33, %v1294_v31  ;;  %v1876_v42 = vpack.c.bf16 %v1764_v34, %v1762_v32  ;;  %v1186_v43 = vpop.f32.mrb[96].mxu0  ;;  %v1654_v37 = vpop.f32.mrb[96].mxu1 }
 0x20e   :  { %v1187_v44 = vadd.f32 %v1186_v43, %v3541_v51  ;;  %v1655_v38 = vadd.f32 %v1654_v37, %v3543_v52  ;;  %v1188_v39 = vpop.f32.mrb[97].mxu0  ;;  %v1656_v40 = vpop.f32.mrb[97].mxu1 }
 0x20f   :  { %v1189_v45 = vadd.f32 %v1188_v39, %v3545_v53  ;;  %v1657_v46 = vadd.f32 %v1656_v40, %v3547_v54  ;;  %v1190_v47 = vpop.f32.mrb[98].mxu0  ;;  %v1658_v48 = vpop.f32.mrb[98].mxu1  ;;  %2110 = vmatprep.mubr.bf16.mxu0 %v1876_v42  ;;  %2367 = vmatprep.mubr.bf16.mxu1 %v1812_v41 }
 0x210   :  { %v1191_v49 = vadd.f32 %v1190_v47, %v3541_v51  ;;  %v1659_v50 = vadd.f32 %v1658_v48, %v3543_v52  ;;  %v1192_v55 = vpop.f32.mrb[99].mxu0  ;;  %v1660_v56 = vpop.f32.mrb[99].mxu1  ;;  %2111 = vmatmul.mubr.bf16.gmra.mrb[156].mxu0 %v1875_v36  ;;  %2368 = vmatmul.mubr.bf16.gmra.mrb[156].mxu1 %v1811_v35  ;;  %v1297_v59 = vmax.f32 %v1187_v44, 0.0  ;;  %v1765_v60 = vmax.f32 %v1655_v38, 0.0 }
 0x211   :  { %v1193_v57 = vadd.f32 %v1192_v55, %v3545_v53  ;;  %v1661_v58 = vadd.f32 %v1660_v56, %v3547_v54  ;;  %v1298_v63 = vmax.f32 %v1189_v45, 0.0  ;;  %v1766_v1 = vmax.f32 %v1657_v46, 0.0 }
 0x212   :  { %v1299_v61 = vmax.f32 %v1191_v49, 0.0  ;;  %v1767_v62 = vmax.f32 %v1659_v50, 0.0 }
 0x213   :  { %v1300_v2 = vmax.f32 %v1193_v57, 0.0  ;;  %v1768_v3 = vmax.f32 %v1661_v58, 0.0 }
 0x214   :  { %v1813_v4 = vpack.c.bf16 %v1299_v61, %v1297_v59  ;;  %v1877_v5 = vpack.c.bf16 %v1767_v62, %v1765_v60 }
 0x215   :  { %v1814_v6 = vpack.c.bf16 %v1300_v2, %v1298_v63  ;;  %v1878_v7 = vpack.c.bf16 %v1768_v3, %v1766_v1  ;;  %v1196_v8 = vpop.f32.mrb[100].mxu0  ;;  %v1664_v9 = vpop.f32.mrb[100].mxu1 }
 0x216   :  { %v1197_v10 = vadd.f32 %v1196_v8, %v3541_v51  ;;  %v1665_v11 = vadd.f32 %v1664_v9, %v3543_v52  ;;  %v1198_v12 = vpop.f32.mrb[101].mxu0  ;;  %v1666_v13 = vpop.f32.mrb[101].mxu1 }
 0x217   :  { %v1199_v14 = vadd.f32 %v1198_v12, %v3545_v53  ;;  %v1667_v15 = vadd.f32 %v1666_v13, %v3547_v54  ;;  %v1200_v16 = vpop.f32.mrb[102].mxu0  ;;  %v1668_v17 = vpop.f32.mrb[102].mxu1  ;;  %2118 = vmatprep.mubr.bf16.mxu0 %v1878_v7  ;;  %2375 = vmatprep.mubr.bf16.mxu1 %v1814_v6 }
 0x218   :  { %v1201_v18 = vadd.f32 %v1200_v16, %v3541_v51  ;;  %v1669_v19 = vadd.f32 %v1668_v17, %v3543_v52  ;;  %v1202_v20 = vpop.f32.mrb[103].mxu0  ;;  %v1670_v21 = vpop.f32.mrb[103].mxu1  ;;  %2119 = vmatmul.mubr.bf16.gmra.mrb[160].mxu0 %v1877_v5  ;;  %2376 = vmatmul.mubr.bf16.gmra.mrb[160].mxu1 %v1813_v4  ;;  %v1301_v24 = vmax.f32 %v1197_v10, 0.0  ;;  %v1769_v25 = vmax.f32 %v1665_v11, 0.0 }
 0x219   :  { %v1203_v22 = vadd.f32 %v1202_v20, %v3545_v53  ;;  %v1671_v23 = vadd.f32 %v1670_v21, %v3547_v54  ;;  %v1302_v28 = vmax.f32 %v1199_v14, 0.0  ;;  %v1770_v29 = vmax.f32 %v1667_v15, 0.0 }
 0x21a   :  { %v1303_v26 = vmax.f32 %v1201_v18, 0.0  ;;  %v1771_v27 = vmax.f32 %v1669_v19, 0.0 }
 0x21b   :  { %v1304_v30 = vmax.f32 %v1203_v22, 0.0  ;;  %v1772_v31 = vmax.f32 %v1671_v23, 0.0 }
 0x21c   :  { %v1815_v32 = vpack.c.bf16 %v1303_v26, %v1301_v24  ;;  %v1879_v33 = vpack.c.bf16 %v1771_v27, %v1769_v25 }
 0x21d   :  { %v1816_v34 = vpack.c.bf16 %v1304_v30, %v1302_v28  ;;  %v1880_v35 = vpack.c.bf16 %v1772_v31, %v1770_v29  ;;  %v1206_v36 = vpop.f32.mrb[104].mxu0  ;;  %v1674_v41 = vpop.f32.mrb[104].mxu1 }
 0x21e   :  { %v1207_v42 = vadd.f32 %v1206_v36, %v3541_v51  ;;  %v1675_v43 = vadd.f32 %v1674_v41, %v3543_v52  ;;  %v1208_v37 = vpop.f32.mrb[105].mxu0  ;;  %v1676_v44 = vpop.f32.mrb[105].mxu1 }
 0x21f   :  { %v1209_v38 = vadd.f32 %v1208_v37, %v3545_v53  ;;  %v1677_v39 = vadd.f32 %v1676_v44, %v3547_v54  ;;  %v1210_v40 = vpop.f32.mrb[106].mxu0  ;;  %v1678_v45 = vpop.f32.mrb[106].mxu1  ;;  %2126 = vmatprep.mubr.bf16.mxu0 %v1880_v35  ;;  %2383 = vmatprep.mubr.bf16.mxu1 %v1816_v34 }
 0x220   :  { %v1211_v46 = vadd.f32 %v1210_v40, %v3541_v51  ;;  %v1679_v47 = vadd.f32 %v1678_v45, %v3543_v52  ;;  %v1212_v48 = vpop.f32.mrb[107].mxu0  ;;  %v1680_v49 = vpop.f32.mrb[107].mxu1  ;;  %2127 = vmatmul.mubr.bf16.gmra.mrb[164].mxu0 %v1879_v33  ;;  %2384 = vmatmul.mubr.bf16.gmra.mrb[164].mxu1 %v1815_v32  ;;  %v1305_v56 = vmax.f32 %v1207_v42, 0.0  ;;  %v1773_v57 = vmax.f32 %v1675_v43, 0.0 }
 0x221   :  { %v1213_v50 = vadd.f32 %v1212_v48, %v3545_v53  ;;  %v1681_v55 = vadd.f32 %v1680_v49, %v3547_v54  ;;  %v1306_v60 = vmax.f32 %v1209_v38, 0.0  ;;  %v1774_v61 = vmax.f32 %v1677_v39, 0.0 }
 0x222   :  { %v1307_v58 = vmax.f32 %v1211_v46, 0.0  ;;  %v1775_v59 = vmax.f32 %v1679_v47, 0.0 }
 0x223   :  { %v1308_v62 = vmax.f32 %v1213_v50, 0.0  ;;  %v1776_v63 = vmax.f32 %v1681_v55, 0.0 }
 0x224   :  { %v1817_v1 = vpack.c.bf16 %v1307_v58, %v1305_v56  ;;  %v1881_v2 = vpack.c.bf16 %v1775_v59, %v1773_v57 }
 0x225   :  { %v1818_v3 = vpack.c.bf16 %v1308_v62, %v1306_v60  ;;  %v1882_v4 = vpack.c.bf16 %v1776_v63, %v1774_v61  ;;  %v1216_v5 = vpop.f32.mrb[108].mxu0  ;;  %v1684_v6 = vpop.f32.mrb[108].mxu1 }
 0x226   :  { %v1217_v7 = vadd.f32 %v1216_v5, %v3541_v51  ;;  %v1685_v8 = vadd.f32 %v1684_v6, %v3543_v52  ;;  %v1218_v9 = vpop.f32.mrb[109].mxu0  ;;  %v1686_v10 = vpop.f32.mrb[109].mxu1 }
 0x227   :  { %v1219_v11 = vadd.f32 %v1218_v9, %v3545_v53  ;;  %v1687_v12 = vadd.f32 %v1686_v10, %v3547_v54  ;;  %v1220_v13 = vpop.f32.mrb[110].mxu0  ;;  %v1688_v14 = vpop.f32.mrb[110].mxu1  ;;  %2134 = vmatprep.mubr.bf16.mxu0 %v1882_v4  ;;  %2391 = vmatprep.mubr.bf16.mxu1 %v1818_v3 }
 0x228   :  { %v1221_v15 = vadd.f32 %v1220_v13, %v3541_v51  ;;  %v1689_v16 = vadd.f32 %v1688_v14, %v3543_v52  ;;  %v1222_v17 = vpop.f32.mrb[111].mxu0  ;;  %v1690_v18 = vpop.f32.mrb[111].mxu1  ;;  %2135 = vmatmul.mubr.bf16.gmra.mrb[168].mxu0 %v1881_v2  ;;  %2392 = vmatmul.mubr.bf16.gmra.mrb[168].mxu1 %v1817_v1  ;;  %v1309_v21 = vmax.f32 %v1217_v7, 0.0  ;;  %v1777_v22 = vmax.f32 %v1685_v8, 0.0 }
 0x229   :  { %v1223_v19 = vadd.f32 %v1222_v17, %v3545_v53  ;;  %v1691_v20 = vadd.f32 %v1690_v18, %v3547_v54  ;;  %v1310_v25 = vmax.f32 %v1219_v11, 0.0  ;;  %v1778_v26 = vmax.f32 %v1687_v12, 0.0 }
 0x22a   :  { %v1311_v23 = vmax.f32 %v1221_v15, 0.0  ;;  %v1779_v24 = vmax.f32 %v1689_v16, 0.0 }
 0x22b   :  { %v1312_v27 = vmax.f32 %v1223_v19, 0.0  ;;  %v1780_v28 = vmax.f32 %v1691_v20, 0.0 }
 0x22c   :  { %v1819_v29 = vpack.c.bf16 %v1311_v23, %v1309_v21  ;;  %v1883_v30 = vpack.c.bf16 %v1779_v24, %v1777_v22 }
 0x22d   :  { %v1820_v31 = vpack.c.bf16 %v1312_v27, %v1310_v25  ;;  %v1884_v32 = vpack.c.bf16 %v1780_v28, %v1778_v26  ;;  %v1226_v33 = vpop.f32.mrb[112].mxu0  ;;  %v1694_v34 = vpop.f32.mrb[112].mxu1 }
 0x22e   :  { %v1227_v35 = vadd.f32 %v1226_v33, %v3541_v51  ;;  %v1695_v36 = vadd.f32 %v1694_v34, %v3543_v52  ;;  %v1228_v41 = vpop.f32.mrb[113].mxu0  ;;  %v1696_v42 = vpop.f32.mrb[113].mxu1 }
 0x22f   :  { %v1229_v43 = vadd.f32 %v1228_v41, %v3545_v53  ;;  %v1697_v37 = vadd.f32 %v1696_v42, %v3547_v54  ;;  %v1230_v44 = vpop.f32.mrb[114].mxu0  ;;  %v1698_v38 = vpop.f32.mrb[114].mxu1  ;;  %2142 = vmatprep.mubr.bf16.mxu0 %v1884_v32  ;;  %2399 = vmatprep.mubr.bf16.mxu1 %v1820_v31 }
 0x230   :  { %v1231_v39 = vadd.f32 %v1230_v44, %v3541_v51  ;;  %v1699_v40 = vadd.f32 %v1698_v38, %v3543_v52  ;;  %v1232_v45 = vpop.f32.mrb[115].mxu0  ;;  %v1700_v46 = vpop.f32.mrb[115].mxu1  ;;  %2143 = vmatmul.mubr.bf16.gmra.mrb[172].mxu0 %v1883_v30  ;;  %2400 = vmatmul.mubr.bf16.gmra.mrb[172].mxu1 %v1819_v29  ;;  %v1313_v49 = vmax.f32 %v1227_v35, 0.0  ;;  %v1781_v50 = vmax.f32 %v1695_v36, 0.0 }
 0x231   :  { %v1233_v47 = vadd.f32 %v1232_v45, %v3545_v53  ;;  %v1701_v48 = vadd.f32 %v1700_v46, %v3547_v54  ;;  %v1314_v57 = vmax.f32 %v1229_v43, 0.0  ;;  %v1782_v58 = vmax.f32 %v1697_v37, 0.0 }
 0x232   :  { %v1315_v55 = vmax.f32 %v1231_v39, 0.0  ;;  %v1783_v56 = vmax.f32 %v1699_v40, 0.0 }
 0x233   :  { %v1316_v59 = vmax.f32 %v1233_v47, 0.0  ;;  %v1784_v60 = vmax.f32 %v1701_v48, 0.0 }
 0x234   :  { %v1821_v61 = vpack.c.bf16 %v1315_v55, %v1313_v49  ;;  %v1885_v62 = vpack.c.bf16 %v1783_v56, %v1781_v50 }
 0x235   :  { %v1822_v63 = vpack.c.bf16 %v1316_v59, %v1314_v57  ;;  %v1886_v1 = vpack.c.bf16 %v1784_v60, %v1782_v58  ;;  %v1236_v2 = vpop.f32.mrb[116].mxu0  ;;  %v1704_v3 = vpop.f32.mrb[116].mxu1 }
 0x236   :  { %v1237_v4 = vadd.f32 %v1236_v2, %v3541_v51  ;;  %v1705_v5 = vadd.f32 %v1704_v3, %v3543_v52  ;;  %v1238_v6 = vpop.f32.mrb[117].mxu0  ;;  %v1706_v7 = vpop.f32.mrb[117].mxu1 }
 0x237   :  { %v1239_v8 = vadd.f32 %v1238_v6, %v3545_v53  ;;  %v1707_v9 = vadd.f32 %v1706_v7, %v3547_v54  ;;  %v1240_v10 = vpop.f32.mrb[118].mxu0  ;;  %v1708_v11 = vpop.f32.mrb[118].mxu1  ;;  %2150 = vmatprep.mubr.bf16.mxu0 %v1886_v1  ;;  %2407 = vmatprep.mubr.bf16.mxu1 %v1822_v63 }
 0x238   :  { %v1241_v12 = vadd.f32 %v1240_v10, %v3541_v51  ;;  %v1709_v13 = vadd.f32 %v1708_v11, %v3543_v52  ;;  %v1242_v14 = vpop.f32.mrb[119].mxu0  ;;  %v1710_v15 = vpop.f32.mrb[119].mxu1  ;;  %2151 = vmatmul.mubr.bf16.gmra.mrb[176].mxu0 %v1885_v62  ;;  %2408 = vmatmul.mubr.bf16.gmra.mrb[176].mxu1 %v1821_v61  ;;  %v1317_v18 = vmax.f32 %v1237_v4, 0.0  ;;  %v1785_v19 = vmax.f32 %v1705_v5, 0.0 }
 0x239   :  { %v1243_v16 = vadd.f32 %v1242_v14, %v3545_v53  ;;  %v1711_v17 = vadd.f32 %v1710_v15, %v3547_v54  ;;  %v1318_v22 = vmax.f32 %v1239_v8, 0.0  ;;  %v1786_v23 = vmax.f32 %v1707_v9, 0.0 }
 0x23a   :  { %v1319_v20 = vmax.f32 %v1241_v12, 0.0  ;;  %v1787_v21 = vmax.f32 %v1709_v13, 0.0 }
 0x23b   :  { %v1320_v24 = vmax.f32 %v1243_v16, 0.0  ;;  %v1788_v25 = vmax.f32 %v1711_v17, 0.0 }
 0x23c   :  { %v1823_v26 = vpack.c.bf16 %v1319_v20, %v1317_v18  ;;  %v1887_v27 = vpack.c.bf16 %v1787_v21, %v1785_v19 }
 0x23d   :  { %v1824_v28 = vpack.c.bf16 %v1320_v24, %v1318_v22  ;;  %v1888_v29 = vpack.c.bf16 %v1788_v25, %v1786_v23  ;;  %v1246_v30 = vpop.f32.mrb[120].mxu0  ;;  %v1714_v31 = vpop.f32.mrb[120].mxu1 }
 0x23e   :  { %v1247_v32 = vadd.f32 %v1246_v30, %v3541_v51  ;;  %v1715_v33 = vadd.f32 %v1714_v31, %v3543_v52  ;;  %v1248_v34 = vpop.f32.mrb[121].mxu0  ;;  %v1716_v35 = vpop.f32.mrb[121].mxu1  ;;  %v3084_v30 = vld [vmem:[%s3847_s4] sm:$0x77] }
 0x23f   :  { %v1249_v36 = vadd.f32 %v1248_v34, %v3545_v53  ;;  %v1717_v41 = vadd.f32 %v1716_v35, %v3547_v54  ;;  %v1250_v42 = vpop.f32.mrb[122].mxu0  ;;  %v1718_v43 = vpop.f32.mrb[122].mxu1  ;;  %2158 = vmatprep.mubr.bf16.mxu0 %v1888_v29  ;;  %2415 = vmatprep.mubr.bf16.mxu1 %v1824_v28 }
 0x240   :  { %v1251_v37 = vadd.f32 %v1250_v42, %v3541_v51  ;;  %v1719_v44 = vadd.f32 %v1718_v43, %v3543_v52  ;;  %v1252_v38 = vpop.f32.mrb[123].mxu0  ;;  %v1720_v39 = vpop.f32.mrb[123].mxu1  ;;  %2159 = vmatmul.mubr.bf16.gmra.mrb[180].mxu0 %v1887_v27  ;;  %2416 = vmatmul.mubr.bf16.gmra.mrb[180].mxu1 %v1823_v26  ;;  %v1321_v46 = vmax.f32 %v1247_v32, 0.0  ;;  %v1789_v47 = vmax.f32 %v1715_v33, 0.0 }
 0x241   :  { %v1253_v40 = vadd.f32 %v1252_v38, %v3545_v53  ;;  %v1721_v45 = vadd.f32 %v1720_v39, %v3547_v54  ;;  %v1322_v50 = vmax.f32 %v1249_v36, 0.0  ;;  %v1790_v55 = vmax.f32 %v1717_v41, 0.0 }
 0x242   :  { %v1323_v48 = vmax.f32 %v1251_v37, 0.0  ;;  %v1791_v49 = vmax.f32 %v1719_v44, 0.0 }
 0x243   :  { %v1324_v56 = vmax.f32 %v1253_v40, 0.0  ;;  %v1792_v57 = vmax.f32 %v1721_v45, 0.0 }
 0x244   :  { %v1825_v58 = vpack.c.bf16 %v1323_v48, %v1321_v46  ;;  %v1889_v59 = vpack.c.bf16 %v1791_v49, %v1789_v47 }
 0x245   :  { %v1826_v60 = vpack.c.bf16 %v1324_v56, %v1322_v50  ;;  %v1890_v61 = vpack.c.bf16 %v1792_v57, %v1790_v55  ;;  %v1256_v62 = vpop.f32.mrb[124].mxu0  ;;  %v1724_v63 = vpop.f32.mrb[124].mxu1 }
 0x246   :  { %v1257_v1 = vadd.f32 %v1256_v62, %v3541_v51  ;;  %v1725_v2 = vadd.f32 %v1724_v63, %v3543_v52  ;;  %v1258_v3 = vpop.f32.mrb[125].mxu0  ;;  %v1726_v4 = vpop.f32.mrb[125].mxu1 }
 0x247   :  { %v1259_v5 = vadd.f32 %v1258_v3, %v3545_v53  ;;  %v1727_v6 = vadd.f32 %v1726_v4, %v3547_v54  ;;  %v1260_v7 = vpop.f32.mrb[126].mxu0  ;;  %v1728_v8 = vpop.f32.mrb[126].mxu1  ;;  %2166 = vmatprep.mubr.bf16.mxu0 %v1890_v61  ;;  %2423 = vmatprep.mubr.bf16.mxu1 %v1826_v60 }
 0x248   :  { %v1261_v9 = vadd.f32 %v1260_v7, %v3541_v51  ;;  %v1729_v10 = vadd.f32 %v1728_v8, %v3543_v52  ;;  %v1262_v11 = vpop.f32.mrb[127].mxu0  ;;  %v1730_v12 = vpop.f32.mrb[127].mxu1  ;;  %2167 = vmatmul.mubr.bf16.gmra.mrb[184].mxu0 %v1889_v59  ;;  %2424 = vmatmul.mubr.bf16.gmra.mrb[184].mxu1 %v1825_v58  ;;  %v1325_v15 = vmax.f32 %v1257_v1, 0.0  ;;  %v1793_v16 = vmax.f32 %v1725_v2, 0.0 }
 0x249   :  { %v1263_v13 = vadd.f32 %v1262_v11, %v3545_v53  ;;  %v1731_v14 = vadd.f32 %v1730_v12, %v3547_v54  ;;  %v1326_v19 = vmax.f32 %v1259_v5, 0.0  ;;  %v1794_v20 = vmax.f32 %v1727_v6, 0.0 }
 0x24a   :  { %v1327_v17 = vmax.f32 %v1261_v9, 0.0  ;;  %v1795_v18 = vmax.f32 %v1729_v10, 0.0  ;;  %v2442_v53 = vsub.s32 2, %v3297_v0 }
 0x24b   :  { %v1328_v21 = vmax.f32 %v1263_v13, 0.0  ;;  %v1796_v22 = vmax.f32 %v1731_v14, 0.0 }
 0x24c   :  { %v1827_v23 = vpack.c.bf16 %v1327_v17, %v1325_v15  ;;  %v1891_v51 = vpack.c.bf16 %v1795_v18, %v1793_v16  ;;  %v3681_v31 = vrot.slane %v3084_v30, %v2442_v53 }
 0x24d   :  { %v1828_v24 = vpack.c.bf16 %v1328_v21, %v1326_v19  ;;  %v1892_v52 = vpack.c.bf16 %v1796_v22, %v1794_v20 }
 0x24f   :  { %2174 = vmatprep.mubr.bf16.mxu0 %v1892_v52  ;;  %2431 = vmatprep.mubr.bf16.mxu1 %v1828_v24 }
 0x250   :  { %2175 = vmatmul.mubr.bf16.gmra.mrb[188].mxu0 %v1891_v51  ;;  %2432 = vmatmul.mubr.bf16.gmra.mrb[188].mxu1 %v1827_v23 }
 0x2ab   :  { %v2714_v25 = vpop.f32.mrb[128].mxu0  ;;  %v2826_v54 = vpop.f32.mrb[128].mxu1 }
 0x2ac   :  { %v2715_v26 = vpop.f32.mrb[129].mxu0  ;;  %v2827_v27 = vpop.f32.mrb[129].mxu1 }
 0x2ad   :  { %v2716_v28 = vadd.f32 %v2715_v26, %v2714_v25  ;;  %v2828_v29 = vadd.f32 %v2827_v27, %v2826_v54  ;;  %v2717_v32 = vpop.f32.mrb[130].mxu0  ;;  %v2829_v33 = vpop.f32.mrb[130].mxu1 }
 0x2ae   :  { %v2718_v34 = vpop.f32.mrb[131].mxu0  ;;  %v2830_v35 = vpop.f32.mrb[131].mxu1 }
 0x2af   :  { %v2314_v36 = vadd.f32 %v2828_v29, %v2716_v28  ;;  %v2719_v41 = vadd.f32 %v2718_v34, %v2717_v32  ;;  %v2831_v42 = vadd.f32 %v2830_v35, %v2829_v33 }
 0x2b1   :  { %v2444_v0 = vadd.f32 %v3681_v31, %v2314_v36  ;;  %v2317_v43 = vadd.f32 %v2831_v42, %v2719_v41 }
 0x2b3   :  { %2477 = vst.msk [vmem:[%s3848_s5] sm:$0xff] %vm2476_vm1, %v2444_v0  ;;  %v2445_v37 = vadd.f32 %v3681_v31, %v2317_v43  ;;  %v2720_v44 = vpop.f32.mrb[132].mxu0  ;;  %v2832_v38 = vpop.f32.mrb[132].mxu1 }
 0x2b4   :  { %v2721_v39 = vpop.f32.mrb[133].mxu0  ;;  %v2833_v40 = vpop.f32.mrb[133].mxu1 }
 0x2b5   :  { %2478 = vst.msk [vmem:[%s3848_s5 + $0x8] sm:$0xff] %vm2476_vm1, %v2445_v37  ;;  %v2722_v45 = vadd.f32 %v2721_v39, %v2720_v44  ;;  %v2834_v46 = vadd.f32 %v2833_v40, %v2832_v38  ;;  %v2723_v47 = vpop.f32.mrb[134].mxu0  ;;  %v2835_v48 = vpop.f32.mrb[134].mxu1 }
 0x2b6   :  { %v2724_v49 = vpop.f32.mrb[135].mxu0  ;;  %v2836_v50 = vpop.f32.mrb[135].mxu1 }
 0x2b7   :  { %v2322_v55 = vadd.f32 %v2834_v46, %v2722_v45  ;;  %v2725_v56 = vadd.f32 %v2724_v49, %v2723_v47  ;;  %v2837_v57 = vadd.f32 %v2836_v50, %v2835_v48 }
 0x2b9   :  { %v2446_v58 = vadd.f32 %v3681_v31, %v2322_v55  ;;  %v2325_v59 = vadd.f32 %v2837_v57, %v2725_v56 }
 0x2bb   :  { %2479 = vst.msk [vmem:[%s3848_s5 + $0x10] sm:$0xff] %vm2476_vm1, %v2446_v58  ;;  %v2447_v60 = vadd.f32 %v3681_v31, %v2325_v59  ;;  %v2726_v61 = vpop.f32.mrb[136].mxu0  ;;  %v2838_v62 = vpop.f32.mrb[136].mxu1 }
 0x2bc   :  { %v2727_v63 = vpop.f32.mrb[137].mxu0  ;;  %v2839_v1 = vpop.f32.mrb[137].mxu1 }
 0x2bd   :  { %2480 = vst.msk [vmem:[%s3848_s5 + $0x18] sm:$0xff] %vm2476_vm1, %v2447_v60  ;;  %v2728_v2 = vadd.f32 %v2727_v63, %v2726_v61  ;;  %v2840_v3 = vadd.f32 %v2839_v1, %v2838_v62  ;;  %v2729_v4 = vpop.f32.mrb[138].mxu0  ;;  %v2841_v5 = vpop.f32.mrb[138].mxu1 }
 0x2be   :  { %v2730_v6 = vpop.f32.mrb[139].mxu0  ;;  %v2842_v7 = vpop.f32.mrb[139].mxu1 }
 0x2bf   :  { %v2330_v8 = vadd.f32 %v2840_v3, %v2728_v2  ;;  %v2731_v9 = vadd.f32 %v2730_v6, %v2729_v4  ;;  %v2843_v10 = vadd.f32 %v2842_v7, %v2841_v5 }
 0x2c1   :  { %v2448_v11 = vadd.f32 %v3681_v31, %v2330_v8  ;;  %v2333_v12 = vadd.f32 %v2843_v10, %v2731_v9 }
 0x2c3   :  { %2481 = vst.msk [vmem:[%s3848_s5 + $0x20] sm:$0xff] %vm2476_vm1, %v2448_v11  ;;  %v2449_v13 = vadd.f32 %v3681_v31, %v2333_v12  ;;  %v2732_v14 = vpop.f32.mrb[140].mxu0  ;;  %v2844_v15 = vpop.f32.mrb[140].mxu1 }
 0x2c4   :  { %v2733_v16 = vpop.f32.mrb[141].mxu0  ;;  %v2845_v17 = vpop.f32.mrb[141].mxu1 }
 0x2c5   :  { %2482 = vst.msk [vmem:[%s3848_s5 + $0x28] sm:$0xff] %vm2476_vm1, %v2449_v13  ;;  %v2734_v18 = vadd.f32 %v2733_v16, %v2732_v14  ;;  %v2846_v19 = vadd.f32 %v2845_v17, %v2844_v15  ;;  %v2735_v20 = vpop.f32.mrb[142].mxu0  ;;  %v2847_v21 = vpop.f32.mrb[142].mxu1 }
 0x2c6   :  { %v2736_v22 = vpop.f32.mrb[143].mxu0  ;;  %v2848_v23 = vpop.f32.mrb[143].mxu1 }
 0x2c7   :  { %v2338_v51 = vadd.f32 %v2846_v19, %v2734_v18  ;;  %v2737_v24 = vadd.f32 %v2736_v22, %v2735_v20  ;;  %v2849_v52 = vadd.f32 %v2848_v23, %v2847_v21 }
 0x2c9   :  { %v2450_v53 = vadd.f32 %v3681_v31, %v2338_v51  ;;  %v2341_v25 = vadd.f32 %v2849_v52, %v2737_v24 }
 0x2cb   :  { %2483 = vst.msk [vmem:[%s3848_s5 + $0x30] sm:$0xff] %vm2476_vm1, %v2450_v53  ;;  %v2451_v54 = vadd.f32 %v3681_v31, %v2341_v25  ;;  %v2738_v26 = vpop.f32.mrb[144].mxu0  ;;  %v2850_v27 = vpop.f32.mrb[144].mxu1 }
 0x2cc   :  { %v2739_v28 = vpop.f32.mrb[145].mxu0  ;;  %v2851_v29 = vpop.f32.mrb[145].mxu1 }
 0x2cd   :  { %2484 = vst.msk [vmem:[%s3848_s5 + $0x38] sm:$0xff] %vm2476_vm1, %v2451_v54  ;;  %v2740_v30 = vadd.f32 %v2739_v28, %v2738_v26  ;;  %v2852_v32 = vadd.f32 %v2851_v29, %v2850_v27  ;;  %v2741_v33 = vpop.f32.mrb[146].mxu0  ;;  %v2853_v34 = vpop.f32.mrb[146].mxu1 }
 0x2ce   :  { %v2742_v35 = vpop.f32.mrb[147].mxu0  ;;  %v2854_v36 = vpop.f32.mrb[147].mxu1 }
 0x2cf   :  { %v2346_v41 = vadd.f32 %v2852_v32, %v2740_v30  ;;  %v2743_v42 = vadd.f32 %v2742_v35, %v2741_v33  ;;  %v2855_v0 = vadd.f32 %v2854_v36, %v2853_v34 }
 0x2d1   :  { %v2452_v43 = vadd.f32 %v3681_v31, %v2346_v41  ;;  %v2349_v37 = vadd.f32 %v2855_v0, %v2743_v42 }
 0x2d3   :  { %2485 = vst.msk [vmem:[%s3848_s5 + $0x40] sm:$0xff] %vm2476_vm1, %v2452_v43  ;;  %v2453_v44 = vadd.f32 %v3681_v31, %v2349_v37  ;;  %v2744_v38 = vpop.f32.mrb[148].mxu0  ;;  %v2856_v39 = vpop.f32.mrb[148].mxu1 }
 0x2d4   :  { %v2745_v40 = vpop.f32.mrb[149].mxu0  ;;  %v2857_v45 = vpop.f32.mrb[149].mxu1 }
 0x2d5   :  { %2486 = vst.msk [vmem:[%s3848_s5 + $0x48] sm:$0xff] %vm2476_vm1, %v2453_v44  ;;  %v2746_v46 = vadd.f32 %v2745_v40, %v2744_v38  ;;  %v2858_v47 = vadd.f32 %v2857_v45, %v2856_v39  ;;  %v2747_v48 = vpop.f32.mrb[150].mxu0  ;;  %v2859_v49 = vpop.f32.mrb[150].mxu1 }
 0x2d6   :  { %v2748_v50 = vpop.f32.mrb[151].mxu0  ;;  %v2860_v55 = vpop.f32.mrb[151].mxu1 }
 0x2d7   :  { %v2354_v56 = vadd.f32 %v2858_v47, %v2746_v46  ;;  %v2749_v57 = vadd.f32 %v2748_v50, %v2747_v48  ;;  %v2861_v58 = vadd.f32 %v2860_v55, %v2859_v49 }
 0x2d9   :  { %v2454_v59 = vadd.f32 %v3681_v31, %v2354_v56  ;;  %v2357_v60 = vadd.f32 %v2861_v58, %v2749_v57 }
 0x2db   :  { %2487 = vst.msk [vmem:[%s3848_s5 + $0x50] sm:$0xff] %vm2476_vm1, %v2454_v59  ;;  %v2455_v61 = vadd.f32 %v3681_v31, %v2357_v60  ;;  %v2750_v62 = vpop.f32.mrb[152].mxu0  ;;  %v2862_v63 = vpop.f32.mrb[152].mxu1 }
 0x2dc   :  { %v2751_v1 = vpop.f32.mrb[153].mxu0  ;;  %v2863_v2 = vpop.f32.mrb[153].mxu1 }
 0x2dd   :  { %2488 = vst.msk [vmem:[%s3848_s5 + $0x58] sm:$0xff] %vm2476_vm1, %v2455_v61  ;;  %v2752_v3 = vadd.f32 %v2751_v1, %v2750_v62  ;;  %v2864_v4 = vadd.f32 %v2863_v2, %v2862_v63  ;;  %v2753_v5 = vpop.f32.mrb[154].mxu0  ;;  %v2865_v6 = vpop.f32.mrb[154].mxu1 }
 0x2de   :  { %v2754_v7 = vpop.f32.mrb[155].mxu0  ;;  %v2866_v8 = vpop.f32.mrb[155].mxu1 }
 0x2df   :  { %v2362_v9 = vadd.f32 %v2864_v4, %v2752_v3  ;;  %v2755_v10 = vadd.f32 %v2754_v7, %v2753_v5  ;;  %v2867_v11 = vadd.f32 %v2866_v8, %v2865_v6 }
 0x2e1   :  { %v2456_v12 = vadd.f32 %v3681_v31, %v2362_v9  ;;  %v2365_v13 = vadd.f32 %v2867_v11, %v2755_v10 }
 0x2e3   :  { %2489 = vst.msk [vmem:[%s3848_s5 + $0x60] sm:$0xff] %vm2476_vm1, %v2456_v12  ;;  %v2457_v14 = vadd.f32 %v3681_v31, %v2365_v13  ;;  %v2756_v15 = vpop.f32.mrb[156].mxu0  ;;  %v2868_v16 = vpop.f32.mrb[156].mxu1 }
 0x2e4   :  { %v2757_v17 = vpop.f32.mrb[157].mxu0  ;;  %v2869_v18 = vpop.f32.mrb[157].mxu1 }
 0x2e5   :  { %2490 = vst.msk [vmem:[%s3848_s5 + $0x68] sm:$0xff] %vm2476_vm1, %v2457_v14  ;;  %v2758_v19 = vadd.f32 %v2757_v17, %v2756_v15  ;;  %v2870_v20 = vadd.f32 %v2869_v18, %v2868_v16  ;;  %v2759_v21 = vpop.f32.mrb[158].mxu0  ;;  %v2871_v22 = vpop.f32.mrb[158].mxu1 }
 0x2e6   :  { %v2760_v23 = vpop.f32.mrb[159].mxu0  ;;  %v2872_v51 = vpop.f32.mrb[159].mxu1 }
 0x2e7   :  { %v2370_v24 = vadd.f32 %v2870_v20, %v2758_v19  ;;  %v2761_v52 = vadd.f32 %v2760_v23, %v2759_v21  ;;  %v2873_v53 = vadd.f32 %v2872_v51, %v2871_v22 }
 0x2e9   :  { %v2458_v25 = vadd.f32 %v3681_v31, %v2370_v24  ;;  %v2373_v54 = vadd.f32 %v2873_v53, %v2761_v52 }
 0x2eb   :  { %2491 = vst.msk [vmem:[%s3848_s5 + $0x70] sm:$0xff] %vm2476_vm1, %v2458_v25  ;;  %v2459_v26 = vadd.f32 %v3681_v31, %v2373_v54  ;;  %v2762_v27 = vpop.f32.mrb[160].mxu0  ;;  %v2874_v28 = vpop.f32.mrb[160].mxu1 }
 0x2ec   :  { %v2763_v29 = vpop.f32.mrb[161].mxu0  ;;  %v2875_v30 = vpop.f32.mrb[161].mxu1 }
 0x2ed   :  { %2492 = vst.msk [vmem:[%s3848_s5 + $0x78] sm:$0xff] %vm2476_vm1, %v2459_v26  ;;  %v2764_v32 = vadd.f32 %v2763_v29, %v2762_v27  ;;  %v2876_v33 = vadd.f32 %v2875_v30, %v2874_v28  ;;  %v2765_v34 = vpop.f32.mrb[162].mxu0  ;;  %v2877_v35 = vpop.f32.mrb[162].mxu1 }
 0x2ee   :  { %v2766_v36 = vpop.f32.mrb[163].mxu0  ;;  %v2878_v41 = vpop.f32.mrb[163].mxu1 }
 0x2ef   :  { %v2378_v42 = vadd.f32 %v2876_v33, %v2764_v32  ;;  %v2767_v0 = vadd.f32 %v2766_v36, %v2765_v34  ;;  %v2879_v43 = vadd.f32 %v2878_v41, %v2877_v35 }
 0x2f1   :  { %v2460_v37 = vadd.f32 %v3681_v31, %v2378_v42  ;;  %v2381_v44 = vadd.f32 %v2879_v43, %v2767_v0 }
 0x2f3   :  { %2493 = vst.msk [vmem:[%s3848_s5 + $0x80] sm:$0xff] %vm2476_vm1, %v2460_v37  ;;  %v2461_v38 = vadd.f32 %v3681_v31, %v2381_v44  ;;  %v2768_v39 = vpop.f32.mrb[164].mxu0  ;;  %v2880_v40 = vpop.f32.mrb[164].mxu1 }
 0x2f4   :  { %v2769_v45 = vpop.f32.mrb[165].mxu0  ;;  %v2881_v46 = vpop.f32.mrb[165].mxu1 }
 0x2f5   :  { %2494 = vst.msk [vmem:[%s3848_s5 + $0x88] sm:$0xff] %vm2476_vm1, %v2461_v38  ;;  %v2770_v47 = vadd.f32 %v2769_v45, %v2768_v39  ;;  %v2882_v48 = vadd.f32 %v2881_v46, %v2880_v40  ;;  %v2771_v49 = vpop.f32.mrb[166].mxu0  ;;  %v2883_v50 = vpop.f32.mrb[166].mxu1 }
 0x2f6   :  { %v2772_v55 = vpop.f32.mrb[167].mxu0  ;;  %v2884_v56 = vpop.f32.mrb[167].mxu1 }
 0x2f7   :  { %v2386_v57 = vadd.f32 %v2882_v48, %v2770_v47  ;;  %v2773_v58 = vadd.f32 %v2772_v55, %v2771_v49  ;;  %v2885_v59 = vadd.f32 %v2884_v56, %v2883_v50 }
 0x2f9   :  { %v2462_v60 = vadd.f32 %v3681_v31, %v2386_v57  ;;  %v2389_v61 = vadd.f32 %v2885_v59, %v2773_v58 }
 0x2fb   :  { %2495 = vst.msk [vmem:[%s3848_s5 + $0x90] sm:$0xff] %vm2476_vm1, %v2462_v60  ;;  %v2463_v62 = vadd.f32 %v3681_v31, %v2389_v61  ;;  %v2774_v63 = vpop.f32.mrb[168].mxu0  ;;  %v2886_v1 = vpop.f32.mrb[168].mxu1 }
 0x2fc   :  { %v2775_v2 = vpop.f32.mrb[169].mxu0  ;;  %v2887_v3 = vpop.f32.mrb[169].mxu1 }
 0x2fd   :  { %2496 = vst.msk [vmem:[%s3848_s5 + $0x98] sm:$0xff] %vm2476_vm1, %v2463_v62  ;;  %v2776_v4 = vadd.f32 %v2775_v2, %v2774_v63  ;;  %v2888_v5 = vadd.f32 %v2887_v3, %v2886_v1  ;;  %v2777_v6 = vpop.f32.mrb[170].mxu0  ;;  %v2889_v7 = vpop.f32.mrb[170].mxu1 }
 0x2fe   :  { %v2778_v8 = vpop.f32.mrb[171].mxu0  ;;  %v2890_v9 = vpop.f32.mrb[171].mxu1 }
 0x2ff   :  { %v2394_v10 = vadd.f32 %v2888_v5, %v2776_v4  ;;  %v2779_v11 = vadd.f32 %v2778_v8, %v2777_v6  ;;  %v2891_v12 = vadd.f32 %v2890_v9, %v2889_v7 }
 0x301   :  { %v2464_v13 = vadd.f32 %v3681_v31, %v2394_v10  ;;  %v2397_v14 = vadd.f32 %v2891_v12, %v2779_v11 }
 0x303   :  { %2497 = vst.msk [vmem:[%s3848_s5 + $0xa0] sm:$0xff] %vm2476_vm1, %v2464_v13  ;;  %v2465_v15 = vadd.f32 %v3681_v31, %v2397_v14  ;;  %v2780_v16 = vpop.f32.mrb[172].mxu0  ;;  %v2892_v17 = vpop.f32.mrb[172].mxu1 }
 0x304   :  { %v2781_v18 = vpop.f32.mrb[173].mxu0  ;;  %v2893_v19 = vpop.f32.mrb[173].mxu1 }
 0x305   :  { %2498 = vst.msk [vmem:[%s3848_s5 + $0xa8] sm:$0xff] %vm2476_vm1, %v2465_v15  ;;  %v2782_v20 = vadd.f32 %v2781_v18, %v2780_v16  ;;  %v2894_v21 = vadd.f32 %v2893_v19, %v2892_v17  ;;  %v2783_v22 = vpop.f32.mrb[174].mxu0  ;;  %v2895_v23 = vpop.f32.mrb[174].mxu1 }
 0x306   :  { %v2784_v51 = vpop.f32.mrb[175].mxu0  ;;  %v2896_v24 = vpop.f32.mrb[175].mxu1 }
 0x307   :  { %v2402_v52 = vadd.f32 %v2894_v21, %v2782_v20  ;;  %v2785_v53 = vadd.f32 %v2784_v51, %v2783_v22  ;;  %v2897_v25 = vadd.f32 %v2896_v24, %v2895_v23 }
 0x309   :  { %v2466_v54 = vadd.f32 %v3681_v31, %v2402_v52  ;;  %v2405_v26 = vadd.f32 %v2897_v25, %v2785_v53 }
 0x30b   :  { %2499 = vst.msk [vmem:[%s3848_s5 + $0xb0] sm:$0xff] %vm2476_vm1, %v2466_v54  ;;  %v2467_v27 = vadd.f32 %v3681_v31, %v2405_v26  ;;  %v2786_v28 = vpop.f32.mrb[176].mxu0  ;;  %v2898_v29 = vpop.f32.mrb[176].mxu1 }
 0x30c   :  { %v2787_v30 = vpop.f32.mrb[177].mxu0  ;;  %v2899_v32 = vpop.f32.mrb[177].mxu1 }
 0x30d   :  { %2500 = vst.msk [vmem:[%s3848_s5 + $0xb8] sm:$0xff] %vm2476_vm1, %v2467_v27  ;;  %v2788_v33 = vadd.f32 %v2787_v30, %v2786_v28  ;;  %v2900_v34 = vadd.f32 %v2899_v32, %v2898_v29  ;;  %v2789_v35 = vpop.f32.mrb[178].mxu0  ;;  %v2901_v36 = vpop.f32.mrb[178].mxu1 }
 0x30e   :  { %v2790_v41 = vpop.f32.mrb[179].mxu0  ;;  %v2902_v42 = vpop.f32.mrb[179].mxu1 }
 0x30f   :  { %v2410_v0 = vadd.f32 %v2900_v34, %v2788_v33  ;;  %v2791_v43 = vadd.f32 %v2790_v41, %v2789_v35  ;;  %v2903_v37 = vadd.f32 %v2902_v42, %v2901_v36 }
 0x311   :  { %v2468_v44 = vadd.f32 %v3681_v31, %v2410_v0  ;;  %v2413_v38 = vadd.f32 %v2903_v37, %v2791_v43 }
 0x313   :  { %2501 = vst.msk [vmem:[%s3848_s5 + $0xc0] sm:$0xff] %vm2476_vm1, %v2468_v44  ;;  %v2469_v39 = vadd.f32 %v3681_v31, %v2413_v38  ;;  %v2792_v40 = vpop.f32.mrb[180].mxu0  ;;  %v2904_v45 = vpop.f32.mrb[180].mxu1 }
 0x314   :  { %v2793_v46 = vpop.f32.mrb[181].mxu0  ;;  %v2905_v47 = vpop.f32.mrb[181].mxu1 }
 0x315   :  { %2502 = vst.msk [vmem:[%s3848_s5 + $0xc8] sm:$0xff] %vm2476_vm1, %v2469_v39  ;;  %v2794_v48 = vadd.f32 %v2793_v46, %v2792_v40  ;;  %v2906_v49 = vadd.f32 %v2905_v47, %v2904_v45  ;;  %v2795_v50 = vpop.f32.mrb[182].mxu0  ;;  %v2907_v55 = vpop.f32.mrb[182].mxu1 }
 0x316   :  { %v2796_v56 = vpop.f32.mrb[183].mxu0  ;;  %v2908_v57 = vpop.f32.mrb[183].mxu1 }
 0x317   :  { %v2418_v58 = vadd.f32 %v2906_v49, %v2794_v48  ;;  %v2797_v59 = vadd.f32 %v2796_v56, %v2795_v50  ;;  %v2909_v60 = vadd.f32 %v2908_v57, %v2907_v55 }
 0x319   :  { %v2470_v61 = vadd.f32 %v3681_v31, %v2418_v58  ;;  %v2421_v62 = vadd.f32 %v2909_v60, %v2797_v59 }
 0x31b   :  { %2503 = vst.msk [vmem:[%s3848_s5 + $0xd0] sm:$0xff] %vm2476_vm1, %v2470_v61  ;;  %v2471_v63 = vadd.f32 %v3681_v31, %v2421_v62  ;;  %v2798_v1 = vpop.f32.mrb[184].mxu0  ;;  %v2910_v2 = vpop.f32.mrb[184].mxu1 }
 0x31c   :  { %v2799_v3 = vpop.f32.mrb[185].mxu0  ;;  %v2911_v4 = vpop.f32.mrb[185].mxu1 }
 0x31d   :  { %2504 = vst.msk [vmem:[%s3848_s5 + $0xd8] sm:$0xff] %vm2476_vm1, %v2471_v63  ;;  %v2800_v5 = vadd.f32 %v2799_v3, %v2798_v1  ;;  %v2912_v6 = vadd.f32 %v2911_v4, %v2910_v2  ;;  %v2801_v7 = vpop.f32.mrb[186].mxu0  ;;  %v2913_v8 = vpop.f32.mrb[186].mxu1 }
 0x31e   :  { %v2802_v9 = vpop.f32.mrb[187].mxu0  ;;  %v2914_v10 = vpop.f32.mrb[187].mxu1 }
 0x31f   :  { %v2426_v11 = vadd.f32 %v2912_v6, %v2800_v5  ;;  %v2803_v12 = vadd.f32 %v2802_v9, %v2801_v7  ;;  %v2915_v13 = vadd.f32 %v2914_v10, %v2913_v8 }
 0x321   :  { %v2472_v14 = vadd.f32 %v3681_v31, %v2426_v11  ;;  %v2429_v15 = vadd.f32 %v2915_v13, %v2803_v12 }
 0x323   :  { %2505 = vst.msk [vmem:[%s3848_s5 + $0xe0] sm:$0xff] %vm2476_vm1, %v2472_v14  ;;  %v2473_v16 = vadd.f32 %v3681_v31, %v2429_v15  ;;  %v2804_v17 = vpop.f32.mrb[188].mxu0  ;;  %v2916_v18 = vpop.f32.mrb[188].mxu1 }
 0x324   :  { %v2805_v19 = vpop.f32.mrb[189].mxu0  ;;  %v2917_v20 = vpop.f32.mrb[189].mxu1 }
 0x325   :  { %2506 = vst.msk [vmem:[%s3848_s5 + $0xe8] sm:$0xff] %vm2476_vm1, %v2473_v16  ;;  %v2806_v21 = vadd.f32 %v2805_v19, %v2804_v17  ;;  %v2918_v22 = vadd.f32 %v2917_v20, %v2916_v18  ;;  %v2807_v23 = vpop.f32.mrb[190].mxu0  ;;  %v2919_v51 = vpop.f32.mrb[190].mxu1 }
 0x326   :  { %v2808_v24 = vpop.f32.mrb[191].mxu0  ;;  %v2920_v52 = vpop.f32.mrb[191].mxu1 }
 0x327   :  { %v2434_v53 = vadd.f32 %v2918_v22, %v2806_v21  ;;  %v2809_v25 = vadd.f32 %v2808_v24, %v2807_v23  ;;  %v2921_v54 = vadd.f32 %v2920_v52, %v2919_v51 }
 0x329   :  { %v2474_v26 = vadd.f32 %v3681_v31, %v2434_v53  ;;  %v2437_v27 = vadd.f32 %v2921_v54, %v2809_v25 }
 0x32b   :  { %2507 = vst.msk [vmem:[%s3848_s5 + $0xf0] sm:$0xff] %vm2476_vm1, %v2474_v26  ;;  %v2475_v28 = vadd.f32 %v3681_v31, %v2437_v27 }
 0x32d   :  { %2508 = vst.msk [vmem:[%s3848_s5 + $0xf8] sm:$0xff] %vm2476_vm1, %v2475_v28 }
 0x32e   :  { %2513 = vsyncpa [#allocation3], 1 }

</bundles_post_ra>
